<compile_context>
chip_gen: v7x
topology: tpu7x:2x2x1
jax: 0.10.0
libtpu: 0.0.40
codegen_flags: <defaults>
</compile_context>

<pallas_src>
import numpy as np
import jax
import jax.numpy as jnp
from jax.experimental import pallas as pl
from jax.experimental.pallas import tpu as pltpu

# data_config constants (SFA3D defaults)
NUM_CLASSES = 3
NUM_CENTER_OFFSET = 2
NUM_Z = 1
NUM_DIM = 3
NUM_DIRECTION = 2

HEAD_SPECS = {
    "hm_cen": NUM_CLASSES,
    "cen_offset": NUM_CENTER_OFFSET,
    "z_coor": NUM_Z,
    "dim": NUM_DIM,
    "direction": NUM_DIRECTION,
}


def _fused_heads_kernel(x_ref, w1_ref, b1_ref, w2_ref, b2_ref, out_ref):
    """One batch element, all five heads fused.

    x_ref  : (1, Cin, H+2, W+2)  zero-padded NCHW input tile
    w1_ref : (Ch_tot, 9*Cin)     fused 3x3 weights, K index = (dy*3+dx)*Cin + c
    b1_ref : (Ch_tot, 1)
    w2_ref : (Cout_tot, Ch_tot)  block-diagonal fused 1x1 weights
    b2_ref : (Cout_tot, 1)
    out_ref: (1, Cout_tot, H*W)  lane-dense output (NCHW flattened over H*W)
    """
    Cin = x_ref.shape[1]
    H = x_ref.shape[2] - 2
    W = x_ref.shape[3] - 2

    # im2col: build the (9*Cin, H*W) patch tensor once, then a single K=9*Cin
    # MXU matmul (MXU accumulates internally; no per-tap VPU accumulation).
    taps = []
    for dy in range(3):
        for dx in range(3):
            taps.append(x_ref[0, :, dy:dy + H, dx:dx + W].reshape(Cin, H * W))
    cols = jnp.concatenate(taps, axis=0)                         # (9*Cin, H*W)

    hidden = jnp.dot(w1_ref[...], cols,
                     preferred_element_type=jnp.float32)         # (Ch_tot, H*W)
    hidden = jnp.maximum(hidden + b1_ref[...], 0.0)              # bias + ReLU
    hidden = hidden.astype(w2_ref.dtype)

    out = jnp.dot(w2_ref[...], hidden,
                  preferred_element_type=jnp.float32) + b2_ref[...]
    out_ref[0] = out.astype(out_ref.dtype)                       # (Cout_tot, H*W)


def _run_fused(x_padded, w1, b1, w2, b2, H, W):
    N, Cin = x_padded.shape[0], x_padded.shape[1]
    ch_tot = w1.shape[0]
    cout_tot = w2.shape[0]
    # TODO(synk): at real SFA3D resolution (e.g. 152x152, Cin=64) add a row-block
    # grid axis with a 1-row halo and set vmem_limit_bytes for v7x's smaller VMEM.
    return pl.pallas_call(
        _fused_heads_kernel,
        out_shape=jax.ShapeDtypeStruct((N, cout_tot, H * W), jnp.float32),
        grid=(N,),
        in_specs=[
            pl.BlockSpec((1, Cin, H + 2, W + 2), lambda n: (n, 0, 0, 0)),
            pl.BlockSpec((ch_tot, 9 * Cin), lambda n: (0, 0)),
            pl.BlockSpec((ch_tot, 1), lambda n: (0, 0)),
            pl.BlockSpec((cout_tot, ch_tot), lambda n: (0, 0)),
            pl.BlockSpec((cout_tot, 1), lambda n: (0, 0)),
        ],
        out_specs=pl.BlockSpec((1, cout_tot, H * W), lambda n: (n, 0, 0)),
        compiler_params=pltpu.CompilerParams(
            dimension_semantics=("parallel",)),
    )(x_padded, w1, b1, w2, b2)


def init_params(key, input_channel, head_conv):
    """Deterministic synthetic parameters in PyTorch weight layout."""
    assert head_conv > 0
    # TODO(synk): head_conv <= 0 branch (single 1x1 conv head) not implemented here.
    params = {}
    for i, (name, cout) in enumerate(HEAD_SPECS.items()):
        k = jax.random.fold_in(key, i)
        k1, k2, k3, k4 = jax.random.split(k, 4)
        w1 = jax.random.normal(k1, (head_conv, input_channel, 3, 3),
                               jnp.float32) / np.sqrt(input_channel * 9)
        b1 = jax.random.normal(k2, (head_conv,), jnp.float32) * 0.01
        w2 = jax.random.normal(k3, (cout, head_conv, 1, 1),
                               jnp.float32) / np.sqrt(head_conv)
        b2 = jax.random.normal(k4, (cout,), jnp.float32) * 0.01
        params[name] = (w1, b1, w2, b2)
    return params


def prepare_fused_params(params, dtype=jnp.float32):
    """One-time re-layout of PyTorch-layout params into the fused kernel layout.

    dtype=jnp.bfloat16 runs the matmuls in bf16 (still f32 accumulation) for
    higher MXU throughput; default f32 keeps full precision.
    """
    w1_rows, b1_rows, w2_blocks, b2_rows = [], [], [], []
    for name in HEAD_SPECS:
        w1_t, b1_t, w2_t, b2_t = params[name]
        ch, cin = w1_t.shape[0], w1_t.shape[1]
        # OIHW (Ch, Cin, 3, 3) -> (Ch, 3, 3, Cin) -> (Ch, 9*Cin); K = (dy*3+dx)*Cin + c
        w1_rows.append(jnp.transpose(w1_t, (0, 2, 3, 1)).reshape(ch, 9 * cin))
        b1_rows.append(b1_t)
        w2_blocks.append(w2_t[:, :, 0, 0])                       # (Cout_h, Ch)
        b2_rows.append(b2_t)

    w1_all = jnp.concatenate(w1_rows, axis=0).astype(dtype)      # (5*Ch, 9*Cin)
    b1_all = jnp.concatenate(b1_rows).reshape(-1, 1).astype(jnp.float32)
    ch_tot = w1_all.shape[0]
    cout_tot = sum(HEAD_SPECS.values())

    # Block-diagonal 1x1 weights: head h reads only its own hidden slice.
    w2_all = jnp.zeros((cout_tot, ch_tot), dtype)
    r = c = 0
    for blk in w2_blocks:
        w2_all = w2_all.at[r:r + blk.shape[0], c:c + blk.shape[1]].set(
            blk.astype(dtype))
        r += blk.shape[0]
        c += blk.shape[1]
    b2_all = jnp.concatenate(b2_rows).reshape(-1, 1).astype(jnp.float32)
    return w1_all, b1_all, w2_all, b2_all


def prediction_head_forward(x_nchw, fused_params):
    """Forward pass. x_nchw: (N, C_in, H, W) float32. Returns dict of NCHW outputs."""
    w1, b1, w2, b2 = fused_params
    N, Cin, H, W = x_nchw.shape
    x_padded = jnp.pad(x_nchw, ((0, 0), (0, 0), (1, 1), (1, 1))).astype(w1.dtype)
    out_flat = _run_fused(x_padded, w1, b1, w2, b2, H, W)        # (N, Cout_tot, H*W)
    out = out_flat.reshape(N, -1, H, W)                          # pure reshape -> NCHW
    outputs = {}
    off = 0
    for name, c in HEAD_SPECS.items():
        outputs[name] = out[:, off:off + c]
        off += c
    return outputs


def _ref_head(x_nchw, w1, b1, w2, b2):
    """XLA reference for verification (same semantics as the PyTorch head)."""
    h = jax.lax.conv_general_dilated(
        x_nchw, w1, (1, 1), "SAME",
        dimension_numbers=("NCHW", "OIHW", "NCHW"))
    h = jax.nn.relu(h + b1[None, :, None, None])
    o = jax.lax.conv_general_dilated(
        h, w2, (1, 1), "VALID",
        dimension_numbers=("NCHW", "OIHW", "NCHW"))
    return o + b2[None, :, None, None]


if __name__ == "__main__":
    key = jax.random.PRNGKey(0)
    N, Cin, H, W = 2, 4, 16, 16
    head_conv = 32

    params = init_params(key, Cin, head_conv)
    fused = prepare_fused_params(params)     # one-time weight re-layout
    x = jax.random.normal(jax.random.fold_in(key, 99), (N, Cin, H, W),
                          dtype=jnp.float32)

    outputs = prediction_head_forward(x, fused)
    jax.block_until_ready(outputs)

    # Sanity-check every head against the XLA conv reference.
    for name, (w1, b1, w2, b2) in params.items():
        ref = _ref_head(x, w1, b1, w2, b2)
        np.testing.assert_allclose(np.asarray(outputs[name]), np.asarray(ref),
                                   rtol=1e-4, atol=1e-4)
        assert outputs[name].shape == (N, HEAD_SPECS[name], H, W)

    print("KERNEL_OK")
</pallas_src>

<mosaic_0001>
module attributes {stable_mosaic.version = 11 : i64} {
  func.func @_fused_heads_kernel(%arg0: i32, %arg1: memref<1x4x18x18xf32, #tpu.memory_space<vmem>>, %arg2: memref<160x36xf32, #tpu.memory_space<vmem>>, %arg3: memref<160x1xf32, #tpu.memory_space<vmem>>, %arg4: memref<11x160xf32, #tpu.memory_space<vmem>>, %arg5: memref<11x1xf32, #tpu.memory_space<vmem>>, %arg6: memref<1x11x256xf32, #tpu.memory_space<vmem>>) attributes {dimension_semantics = [#tpu.dimension_semantics<parallel>], iteration_bounds = array<i64: 2>, scalar_prefetch = 0 : i64, scratch_operands = 0 : i64, tpu.core_type = #tpu.core_type<tc>, window_params = [{transform_indices = @transform_0, window_bounds = array<i64: 1, 4, 18, 18>}, {pipeline_mode = #tpu.pipeline_mode<synchronous>, transform_indices = @transform_1, window_bounds = array<i64: 160, 36>}, {pipeline_mode = #tpu.pipeline_mode<synchronous>, transform_indices = @transform_2, window_bounds = array<i64: 160, 1>}, {pipeline_mode = #tpu.pipeline_mode<synchronous>, transform_indices = @transform_3, window_bounds = array<i64: 11, 160>}, {pipeline_mode = #tpu.pipeline_mode<synchronous>, transform_indices = @transform_4, window_bounds = array<i64: 11, 1>}, {transform_indices = @transform_5, window_bounds = array<i64: 1, 11, 256>}]} {
    %c0 = arith.constant 0 : index
    %c0_0 = arith.constant 0 : index
    %c0_1 = arith.constant 0 : index
    %c0_2 = arith.constant 0 : index
    %0 = vector.load %arg1[%c0, %c0_0, %c0_1, %c0_2] : memref<1x4x18x18xf32, #tpu.memory_space<vmem>>, vector<1x4x16x16xf32>
    %1 = vector.shape_cast %0 : vector<1x4x16x16xf32> to vector<4x16x16xf32>
    %2 = vector.shape_cast %1 : vector<4x16x16xf32> to vector<4x256xf32>
    %c0_3 = arith.constant 0 : index
    %c0_4 = arith.constant 0 : index
    %c0_5 = arith.constant 0 : index
    %c1 = arith.constant 1 : index
    %3 = vector.load %arg1[%c0_3, %c0_4, %c0_5, %c1] : memref<1x4x18x18xf32, #tpu.memory_space<vmem>>, vector<1x4x16x16xf32>
    %4 = vector.shape_cast %3 : vector<1x4x16x16xf32> to vector<4x16x16xf32>
    %5 = vector.shape_cast %4 : vector<4x16x16xf32> to vector<4x256xf32>
    %c0_6 = arith.constant 0 : index
    %c0_7 = arith.constant 0 : index
    %c0_8 = arith.constant 0 : index
    %c2 = arith.constant 2 : index
    %6 = vector.load %arg1[%c0_6, %c0_7, %c0_8, %c2] : memref<1x4x18x18xf32, #tpu.memory_space<vmem>>, vector<1x4x16x16xf32>
    %7 = vector.shape_cast %6 : vector<1x4x16x16xf32> to vector<4x16x16xf32>
    %8 = vector.shape_cast %7 : vector<4x16x16xf32> to vector<4x256xf32>
    %c0_9 = arith.constant 0 : index
    %c0_10 = arith.constant 0 : index
    %c1_11 = arith.constant 1 : index
    %c0_12 = arith.constant 0 : index
    %9 = vector.load %arg1[%c0_9, %c0_10, %c1_11, %c0_12] : memref<1x4x18x18xf32, #tpu.memory_space<vmem>>, vector<1x4x16x16xf32>
    %10 = vector.shape_cast %9 : vector<1x4x16x16xf32> to vector<4x16x16xf32>
    %11 = vector.shape_cast %10 : vector<4x16x16xf32> to vector<4x256xf32>
    %c0_13 = arith.constant 0 : index
    %c0_14 = arith.constant 0 : index
    %c1_15 = arith.constant 1 : index
    %c1_16 = arith.constant 1 : index
    %12 = vector.load %arg1[%c0_13, %c0_14, %c1_15, %c1_16] : memref<1x4x18x18xf32, #tpu.memory_space<vmem>>, vector<1x4x16x16xf32>
    %13 = vector.shape_cast %12 : vector<1x4x16x16xf32> to vector<4x16x16xf32>
    %14 = vector.shape_cast %13 : vector<4x16x16xf32> to vector<4x256xf32>
    %c0_17 = arith.constant 0 : index
    %c0_18 = arith.constant 0 : index
    %c1_19 = arith.constant 1 : index
    %c2_20 = arith.constant 2 : index
    %15 = vector.load %arg1[%c0_17, %c0_18, %c1_19, %c2_20] : memref<1x4x18x18xf32, #tpu.memory_space<vmem>>, vector<1x4x16x16xf32>
    %16 = vector.shape_cast %15 : vector<1x4x16x16xf32> to vector<4x16x16xf32>
    %17 = vector.shape_cast %16 : vector<4x16x16xf32> to vector<4x256xf32>
    %c0_21 = arith.constant 0 : index
    %c0_22 = arith.constant 0 : index
    %c2_23 = arith.constant 2 : index
    %c0_24 = arith.constant 0 : index
    %18 = vector.load %arg1[%c0_21, %c0_22, %c2_23, %c0_24] : memref<1x4x18x18xf32, #tpu.memory_space<vmem>>, vector<1x4x16x16xf32>
    %19 = vector.shape_cast %18 : vector<1x4x16x16xf32> to vector<4x16x16xf32>
    %20 = vector.shape_cast %19 : vector<4x16x16xf32> to vector<4x256xf32>
    %c0_25 = arith.constant 0 : index
    %c0_26 = arith.constant 0 : index
    %c2_27 = arith.constant 2 : index
    %c1_28 = arith.constant 1 : index
    %21 = vector.load %arg1[%c0_25, %c0_26, %c2_27, %c1_28] : memref<1x4x18x18xf32, #tpu.memory_space<vmem>>, vector<1x4x16x16xf32>
    %22 = vector.shape_cast %21 : vector<1x4x16x16xf32> to vector<4x16x16xf32>
    %23 = vector.shape_cast %22 : vector<4x16x16xf32> to vector<4x256xf32>
    %c0_29 = arith.constant 0 : index
    %c0_30 = arith.constant 0 : index
    %c2_31 = arith.constant 2 : index
    %c2_32 = arith.constant 2 : index
    %24 = vector.load %arg1[%c0_29, %c0_30, %c2_31, %c2_32] : memref<1x4x18x18xf32, #tpu.memory_space<vmem>>, vector<1x4x16x16xf32>
    %25 = vector.shape_cast %24 : vector<1x4x16x16xf32> to vector<4x16x16xf32>
    %26 = vector.shape_cast %25 : vector<4x16x16xf32> to vector<4x256xf32>
    %27 = tpu.concatenate %2, %5, %8, %11, %14, %17, %20, %23, %26 in 0 : vector<4x256xf32>, vector<4x256xf32>, vector<4x256xf32>, vector<4x256xf32>, vector<4x256xf32>, vector<4x256xf32>, vector<4x256xf32>, vector<4x256xf32>, vector<4x256xf32> -> vector<36x256xf32>
    %c0_33 = arith.constant 0 : index
    %c0_34 = arith.constant 0 : index
    %28 = vector.load %arg2[%c0_33, %c0_34] : memref<160x36xf32, #tpu.memory_space<vmem>>, vector<160x36xf32>
    %cst = arith.constant dense<0.000000e+00> : vector<160x256xf32>
    %29 = tpu.matmul %28, %27, %cst {dimension_numbers = #tpu.dot_dimension_numbers<[1], [0], [0], [1], [0, 0, 1, 1], [], []>} : vector<160x36xf32>, vector<36x256xf32>, vector<160x256xf32> -> vector<160x256xf32>
    %c0_35 = arith.constant 0 : index
    %c0_36 = arith.constant 0 : index
    %30 = vector.load %arg3[%c0_35, %c0_36] : memref<160x1xf32, #tpu.memory_space<vmem>>, vector<160x1xf32>
    %31 = vector.broadcast %30 : vector<160x1xf32> to vector<160x256xf32>
    %32 = arith.addf %29, %31 : vector<160x256xf32>
    %cst_37 = arith.constant 0.000000e+00 : f32
    %33 = vector.broadcast %cst_37 : f32 to vector<160x256xf32>
    %34 = arith.maximumf %32, %33 : vector<160x256xf32>
    %c0_38 = arith.constant 0 : index
    %c0_39 = arith.constant 0 : index
    %35 = vector.load %arg4[%c0_38, %c0_39] : memref<11x160xf32, #tpu.memory_space<vmem>>, vector<11x160xf32>
    %cst_40 = arith.constant dense<0.000000e+00> : vector<11x256xf32>
    %36 = tpu.matmul %35, %34, %cst_40 {dimension_numbers = #tpu.dot_dimension_numbers<[1], [0], [0], [1], [0, 0, 1, 1], [], []>} : vector<11x160xf32>, vector<160x256xf32>, vector<11x256xf32> -> vector<11x256xf32>
    %c0_41 = arith.constant 0 : index
    %c0_42 = arith.constant 0 : index
    %37 = vector.load %arg5[%c0_41, %c0_42] : memref<11x1xf32, #tpu.memory_space<vmem>>, vector<11x1xf32>
    %38 = vector.broadcast %37 : vector<11x1xf32> to vector<11x256xf32>
    %39 = arith.addf %36, %38 : vector<11x256xf32>
    %c0_43 = arith.constant 0 : index
    %c0_44 = arith.constant 0 : index
    %c0_45 = arith.constant 0 : index
    %40 = vector.load %arg6[%c0_43, %c0_44, %c0_45] : memref<1x11x256xf32, #tpu.memory_space<vmem>>, vector<1x11x256xf32>
    %41 = vector.shape_cast %40 : vector<1x11x256xf32> to vector<11x256xf32>
    %42 = vector.shape_cast %39 : vector<11x256xf32> to vector<1x11x256xf32>
    tpu.vector_store %arg6[%c0_43, %c0_44, %c0_45], %42 {strides = array<i32>} : memref<1x11x256xf32, #tpu.memory_space<vmem>>, vector<1x11x256xf32>,
    return
  }
  func.func @transform_0(%arg0: i32) -> (i32, i32, i32, i32) {
    %c0_i32 = arith.constant 0 : i32
    %c0_i32_0 = arith.constant 0 : i32
    %c0_i32_1 = arith.constant 0 : i32
    %c0_i32_2 = arith.constant 0 : i32
    return %arg0, %c0_i32, %c0_i32_0, %c0_i32_1 : i32, i32, i32, i32
  }
  func.func @transform_1(%arg0: i32) -> (i32, i32) {
    %c0_i32 = arith.constant 0 : i32
    %c0_i32_0 = arith.constant 0 : i32
    %c0_i32_1 = arith.constant 0 : i32
    return %c0_i32, %c0_i32_0 : i32, i32
  }
  func.func @transform_2(%arg0: i32) -> (i32, i32) {
    %c0_i32 = arith.constant 0 : i32
    %c0_i32_0 = arith.constant 0 : i32
    %c0_i32_1 = arith.constant 0 : i32
    return %c0_i32, %c0_i32_0 : i32, i32
  }
  func.func @transform_3(%arg0: i32) -> (i32, i32) {
    %c0_i32 = arith.constant 0 : i32
    %c0_i32_0 = arith.constant 0 : i32
    %c0_i32_1 = arith.constant 0 : i32
    return %c0_i32, %c0_i32_0 : i32, i32
  }
  func.func @transform_4(%arg0: i32) -> (i32, i32) {
    %c0_i32 = arith.constant 0 : i32
    %c0_i32_0 = arith.constant 0 : i32
    %c0_i32_1 = arith.constant 0 : i32
    return %c0_i32, %c0_i32_0 : i32, i32
  }
  func.func @transform_5(%arg0: i32) -> (i32, i32, i32) {
    %c0_i32 = arith.constant 0 : i32
    %c0_i32_0 = arith.constant 0 : i32
    %c0_i32_1 = arith.constant 0 : i32
    return %arg0, %c0_i32, %c0_i32_0 : i32, i32, i32
  }
}

</mosaic_0001>

<bundles_post_ra>
// kernel: tpu_custom_call.1
= control target key start
LH: loop header
LB: loop body
LE: loop exit
PB: predicated region body
PF: predicated region fallthrough
CT: control target
= control target key end

     0   :  { %s3363_s18 = smov 0   ;;  %s4934_s0 = inlined_call_operand.vmem [shape: f32[2,4,18,18], index: 0, kind: input, shape index: {}]   ;;  %s4935_s1 = inlined_call_operand.vmem [shape: f32[160,36], index: 1, kind: input, shape index: {}]   ;;  %s4936_s2 = inlined_call_operand.vmem [shape: f32[160,1], index: 2, kind: input, shape index: {}]   ;;  %s4937_s3 = inlined_call_operand.vmem [shape: f32[11,160], index: 3, kind: input, shape index: {}]   ;;  %s4938_s4 = inlined_call_operand.vmem [shape: f32[11,1], index: 4, kind: input, shape index: {}]   ;;  %s4939_s5 = inlined_call_operand.vmem [shape: f32[2,11,256], index: 5, kind: output, shape index: {}]  }
   0x1 LB: > { %s2901_s19 = sadd.s32 4294967295, %s3318_s18   ;;  %p2905_p0 = scmp.ge.s32.totalorder %s3318_s18, 1  ;;  %s3318_s18 = sphi %s3363_s18, %s15_s18  }
   0x2   : > { %p187_p1 = scmp.lt.s32.totalorder %s3318_s18, 3 }
   0x4   : > { %p188_p2 = pnand %p2905_p0, %p187_p1 }
   0x6   : > { %191 = sbr.rel (%p188_p2) target bundleno = 943 (0x3af), region = 40 }
   0xd   : > { %p215_p3 = scmp.lt.s32.totalorder %s2901_s19, 1  ;;  %v3320_v0 = vmov 1983009808   ;;  %v238_v2 = vlaneseq  ;;  %s3321_s24 = smov 127   ;;  %v4948_v13 = vmov 0.0   ;;  %vm425_vm0 = vcmask 130048  }
   0xe   : > { %v236_v1 = vunpack.c.l.s4 %v3320_v0  ;;  %2582 = vmatprep.mubr.f32.mxu0 %v4948_v13  ;;  %s3323_s25 = smov 126   ;;  %s3325_s26 = smov 32   ;;  %vm427_vm1 = vcmask 261120   ;;  %vm429_vm2 = vcmask 392192   ;;  %vm431_vm3 = vcmask 523264  }
   0xf   : > { %s5016_s19 = smov (!%p215_p3, %s2901_s19), 1  ;;  %v3406_v15 = vshrl.u32 %v238_v2, 7  ;;  %s3326_s27 = smov 64   ;;  %vm433_vm4 = vcmask 654336   ;;  %vm435_vm5 = vcmask 785408   ;;  %vm437_vm6 = vcmask 916480  }
  0x10   : > { %s2984_s20 = smul.u32 96, %s5016_s19  ;;  %v237_v14 = vunpack.c.0.s8 %v236_v1  ;;  %s3327_s28 = smov 16   ;;  %vm2302_vm7 = vcmask 1043456   ;;  %vm2451_vm8 = vcmask 293888  }
  0x11   : > { %s3328_s29 = smov 48   ;;  %s3329_s30 = smov 96  }
  0x12   : > { %s3377_s23 = scalar_lea.vmem %s4934_s0, %s2984_s20  ;;  %v3444_v29 = vsub.s32 %v237_v14, %v3406_v15  ;;  %s3330_s6 = smov 80  }
  0x13   : > { %v3380_v3 = vld [vmem:[%s3377_s23 + $0x38] sm:$0xff]  ;;  %v3383_v4 = vld [vmem:[%s3377_s23 + $0x8] sm:$0xff]  ;;  %v3394_v7 = vld [vmem:[%s3377_s23 + $0x50] sm:$0xff]  ;;  %s3331_s7 = smov 112   ;;  %s2935_s8 = sshll.u32 %s5016_s19, 5 }
  0x14   : > { %464 = vrot.lane.b32.xlu1 %v3380_v3, %s3321_s24  ;;  %456 = vrot.lane.b32.xlu0 %v3383_v4, %s3321_s24  ;;  %v301_v5 = vcombine.low %v3383_v4, %v3380_v3  ;;  %v302_v6 = vcombine.high %v3383_v4, %v3380_v3  ;;  %v228_v8 = vld [vmem:[%s3377_s23 + $0x20] sm:$0xff]  ;;  %v3400_v11 = vld [vmem:[%s3377_s23 + $0x18] sm:$0xff]  ;;  %s224_s11 = scalar_lea.vmem %s4939_s5, %s2935_s8 }
  0x15   : > { %v317_v9 = vcombine.low %v228_v8, %v3394_v7  ;;  %v318_v10 = vcombine.high %v228_v8, %v3394_v7  ;;  %v3403_v12 = vld [vmem:[%s3377_s23 + $0x48] sm:$0xff]  ;;  %v3409_v16 = vld [vmem:[%s3377_s23] sm:$0xff]  ;;  %v3416_v19 = vld [vmem:[%s3377_s23 + $0x30] sm:$0xff] }
  0x16   : > { %v249_v17 = vcombine.low %v3400_v11, %v3403_v12  ;;  %v250_v18 = vcombine.high %v3400_v11, %v3403_v12  ;;  %v233_v20 = vcombine.low %v3409_v16, %v3416_v19  ;;  %v234_v21 = vcombine.high %v3409_v16, %v3416_v19  ;;  %v3423_v22 = vld [vmem:[%s3377_s23 + $0x21] sm:$0xff]  ;;  %v3426_v23 = vld [vmem:[%s3377_s23 + $0x51] sm:$0xff]  ;;  %v3432_v24 = vld [vmem:[%s3377_s23 + $0x9] sm:$0xff] }
  0x17   : > { %v1006_v25 = vcombine.low %v3423_v22, %v3426_v23  ;;  %v3437_v26 = vld [vmem:[%s3377_s23 + $0x39] sm:$0xff]  ;;  %v1007_v27 = vcombine.high %v3423_v22, %v3426_v23  ;;  %v3449_v31 = vrot.slane %v301_v5, %v3444_v29  ;;  %v3452_v32 = vrot.slane %v317_v9, %v3444_v29  ;;  %v3462_v34 = vld [vmem:[%s3377_s23 + $0x49] sm:$0xff]  ;;  %v3471_v37 = vld [vmem:[%s3377_s23 + $0x1] sm:$0xff] }
  0x18   : > { %468 = vrot.lane.b32.xlu1 %v3394_v7, %s3321_s24  ;;  %460 = vrot.lane.b32.xlu0 %v228_v8, %s3321_s24  ;;  %v990_v28 = vcombine.low %v3432_v24, %v3437_v26  ;;  %v991_v30 = vcombine.high %v3432_v24, %v3437_v26  ;;  %v3459_v33 = vld [vmem:[%s3377_s23 + $0x19] sm:$0xff]  ;;  %v3478_v40 = vld [vmem:[%s3377_s23 + $0x31] sm:$0xff]  ;;  %v3491_v45 = vrot.slane %v302_v6, %v3444_v29 }
  0x19   : > { %v3465_v35 = vrot.slane %v1006_v25, %v3444_v29  ;;  %v938_v38 = vcombine.low %v3459_v33, %v3462_v34  ;;  %v939_v39 = vcombine.high %v3459_v33, %v3462_v34  ;;  %v3481_v41 = vrot.slane %v1007_v27, %v3444_v29  ;;  %v3590_v9 = vld [vmem:[%s3377_s23 + $0x52] sm:$0xff]  ;;  %v3618_v14 = vld [vmem:[%s3377_s23 + $0x4a] sm:$0xff] }
  0x1a   : > { %v3468_v36 = vrot.slane %v990_v28, %v3444_v29  ;;  %v3484_v42 = vrot.slane %v991_v30, %v3444_v29  ;;  %v922_v43 = vcombine.low %v3471_v37, %v3478_v40  ;;  %v923_v44 = vcombine.high %v3471_v37, %v3478_v40  ;;  %4965 = vst [vmem:[#allocation4_spill] sm:$0xff] %v3618_v14 }
  0x1b   : > { %v3494_v46 = vrot.slane %v318_v10, %v3444_v29  ;;  %v3497_v47 = vrot.slane %v938_v38, %v3444_v29  ;;  %v3500_v48 = vrot.slane %v939_v39, %v3444_v29  ;;  %v334_v53 = vcombine.high %v3449_v31, %v3452_v32  ;;  %v3593_v10 = vld [vmem:[%s3377_s23 + $0x3a] sm:$0xff] }
  0x1c   : > { %458 = vrot.lane.b32.xlu1 %v3400_v11, %s3321_s24  ;;  %454 = vrot.lane.b32.xlu0 %v3409_v16, %s3321_s24  ;;  %v3507_v49 = vrot.slane %v922_v43, %v3444_v29  ;;  %v3510_v50 = vrot.slane %v923_v44, %v3444_v29  ;;  %v1023_v51 = vcombine.high %v3468_v36, %v3465_v35 }
  0x1d   : > { %4963 = vst [vmem:[#allocation2_spill] sm:$0xff] %v3494_v46  ;;  %v1038_v54 = vcombine.low %v3484_v42, %v3481_v41  ;;  %v333_v56 = vcombine.low %v3449_v31, %v3452_v32  ;;  %v3529_v59 = vrot.slane %v249_v17, %v3444_v29  ;;  %v3532_v60 = vrot.slane %v233_v20, %v3444_v29 }
  0x1e   : > { %v955_v52 = vcombine.high %v3507_v49, %v3497_v47  ;;  %v954_v55 = vcombine.low %v3507_v49, %v3497_v47  ;;  %v3538_v61 = vrot.slane %v250_v18, %v3444_v29  ;;  %v3541_v62 = vrot.slane %v234_v21, %v3444_v29 }
  0x1f   : > { %v266_v1 = vcombine.high %v3532_v60, %v3529_v59  ;;  %v3324_v17 = vmov 1934713408  }
  0x20   : > { %466 = vrot.lane.b32.xlu1 %v3403_v12, %s3321_s24  ;;  %462 = vrot.lane.b32.xlu0 %v3416_v19, %s3321_s24  ;;  %v268_v18 = vunpack.c.l.s4 %v3324_v17 }
  0x22   : > { %v269_v21 = vunpack.c.0.s8 %v268_v18 }
  0x24   : > { %690 = vrot.lane.b32.xlu1 %v228_v8, %s3323_s25  ;;  %686 = vrot.lane.b32.xlu0 %v3383_v4, %s3323_s25  ;;  %v3583_v8 = vld [vmem:[%s3377_s23 + $0xa] sm:$0xff] }
  0x28   : > { %698 = vrot.lane.b32.xlu1 %v3394_v7, %s3323_s25  ;;  %694 = vrot.lane.b32.xlu0 %v3380_v3, %s3323_s25  ;;  %v3580_v7 = vld [vmem:[%s3377_s23 + $0x22] sm:$0xff] }
  0x2c   : > { %688 = vrot.lane.b32.xlu1 %v3400_v11, %s3323_s25  ;;  %684 = vrot.lane.b32.xlu0 %v3409_v16, %s3323_s25  ;;  %v3608_v11 = vld [vmem:[%s3377_s23 + $0x1a] sm:$0xff]  ;;  %v3621_v16 = vld [vmem:[%s3377_s23 + $0x32] sm:$0xff] }
  0x2d   : > { %4964 = vst [vmem:[#allocation3_spill] sm:$0xff] %v3608_v11 }
  0x30   : > { %696 = vrot.lane.b32.xlu1 %v3403_v12, %s3323_s25  ;;  %692 = vrot.lane.b32.xlu0 %v3416_v19, %s3323_s25  ;;  %v3611_v12 = vld [vmem:[%s3377_s23 + $0x2] sm:$0xff] }
  0x34   : > { %1372 = vrot.lane.b32.xlu1 %v3423_v22, %s3323_s25  ;;  %1368 = vrot.lane.b32.xlu0 %v3432_v24, %s3323_s25 }
  0x38   : > { %1380 = vrot.lane.b32.xlu1 %v3426_v23, %s3323_s25  ;;  %1376 = vrot.lane.b32.xlu0 %v3437_v26, %s3323_s25 }
  0x3c   : > { %1824 = vrot.lane.b32.xlu1 %v3580_v7, %s3321_s24  ;;  %1820 = vrot.lane.b32.xlu0 %v3583_v8, %s3321_s24 }
  0x40   : > { %1832 = vrot.lane.b32.xlu1 %v3590_v9, %s3321_s24  ;;  %1828 = vrot.lane.b32.xlu0 %v3593_v10, %s3321_s24 }
  0x44   : > { %1370 = vrot.lane.b32.xlu1 %v3459_v33, %s3323_s25  ;;  %1366 = vrot.lane.b32.xlu0 %v3471_v37, %s3323_s25 }
  0x48   : > { %1378 = vrot.lane.b32.xlu1 %v3462_v34, %s3323_s25  ;;  %1374 = vrot.lane.b32.xlu0 %v3478_v40, %s3323_s25 }
  0x4c   : > { %1822 = vrot.lane.b32.xlu1 %v3608_v11, %s3321_s24  ;;  %1818 = vrot.lane.b32.xlu0 %v3611_v12, %s3321_s24 }
  0x50   : > { %1830 = vrot.lane.b32.xlu1 %v3618_v14, %s3321_s24  ;;  %1826 = vrot.lane.b32.xlu0 %v3621_v16, %s3321_s24 }
  0x54   : > { %1142 = vrot.lane.b32.xlu1 %v3423_v22, %s3321_s24  ;;  %1138 = vrot.lane.b32.xlu0 %v3432_v24, %s3321_s24 }
  0x58   : > { %1150 = vrot.lane.b32.xlu1 %v3426_v23, %s3321_s24  ;;  %1146 = vrot.lane.b32.xlu0 %v3437_v26, %s3321_s24  ;;  %v3660_v26 = vsub.s32 %v269_v21, %v3406_v15 }
  0x5a   : > { %v3688_v3 = vrot.slane %v955_v52, %v3660_v26 }
  0x5c   : > { %1140 = vrot.lane.b32.xlu1 %v3459_v33, %s3321_s24  ;;  %1136 = vrot.lane.b32.xlu0 %v3471_v37, %s3321_s24  ;;  %v3674_v37 = vrot.slane %v1023_v51, %v3660_v26 }
  0x60   : > { %1148 = vrot.lane.b32.xlu1 %v3462_v34, %s3321_s24  ;;  %1144 = vrot.lane.b32.xlu0 %v3478_v40, %s3321_s24 }
  0x64   : > { %2050 = vrot.lane.b32.xlu0 %v3583_v8, %s3323_s25  ;;  %2054 = vrot.lane.b32.xlu1 %v3580_v7, %s3323_s25 }
  0x68   : > { %2058 = vrot.lane.b32.xlu0 %v3593_v10, %s3323_s25  ;;  %2062 = vrot.lane.b32.xlu1 %v3590_v9, %s3323_s25 }
  0x6c   : > { %2048 = vrot.lane.b32.xlu0 %v3611_v12, %s3323_s25  ;;  %2052 = vrot.lane.b32.xlu1 %v3608_v11, %s3323_s25 }
  0x70   : > { %2056 = vrot.lane.b32.xlu0 %v3621_v16, %s3323_s25  ;;  %2060 = vrot.lane.b32.xlu1 %v3618_v14, %s3323_s25 }
  0x86   : > { %v465_v19 = vpop.permute.xlu1 %464  ;;  %v457_v20 = vpop.permute.xlu0 %456 }
  0x87   : > { %v546_v22 = vcombine.low %v457_v20, %v465_v19 }
  0x89   : > { %v3663_v27 = vrot.slane %v546_v22, %v3444_v29 }
  0x8a   : > { %v469_v23 = vpop.permute.xlu1 %468  ;;  %v461_v24 = vpop.permute.xlu0 %460 }
  0x8b   : > { %v562_v25 = vcombine.low %v461_v24, %v469_v23  ;;  %v563_v21 = vcombine.high %v461_v24, %v469_v23 }
  0x8d   : > { %v3666_v28 = vrot.slane %v562_v25, %v3444_v29 }
  0x8e   : > { %v459_v30 = vpop.permute.xlu1 %458  ;;  %v455_v33 = vpop.permute.xlu0 %454 }
  0x8f   : > { %v579_v34 = vcombine.high %v3663_v27, %v3666_v28 }
  0x91   : > { %v3677_v15 = vrot.slane %v579_v34, %v3660_v26  ;;  %v547_v34 = vcombine.high %v457_v20, %v465_v19 }
  0x92   : > { %v467_v38 = vpop.permute.xlu1 %466  ;;  %v463_v39 = vpop.permute.xlu0 %462 }
  0x93   : > { %v494_v40 = vcombine.low %v459_v30, %v467_v38  ;;  %v478_v43 = vcombine.low %v455_v33, %v463_v39  ;;  %v3006_v44 = vpack.i.bf16 %v3674_v37, %v3677_v15  ;;  %v3697_v2 = vrot.slane %v547_v34, %v3444_v29 }
  0x94   : > { %v495_v6 = vcombine.high %v459_v30, %v467_v38  ;;  %v479_v34 = vcombine.high %v455_v33, %v463_v39  ;;  %v3731_v33 = vrot.slane %v1038_v54, %v3660_v26 }
  0x95   : > { %v502_v17 = vrot.slane %v494_v40, %v3444_v29  ;;  %v486_v18 = vrot.slane %v478_v43, %v3444_v29  ;;  %3007 = vrot.lane.b32.xlu0 %v3006_v44, %s3325_s26  ;;  %v3694_v40 = vrot.slane %v563_v21, %v3444_v29 }
  0x96   : > { %v691_v51 = vpop.permute.xlu1 %690  ;;  %v687_v22 = vpop.permute.xlu0 %686  ;;  %v3718_v58 = vrot.slane %v495_v6, %v3444_v29 }
  0x97   : > { %v511_v25 = vcombine.high %v486_v18, %v502_v17  ;;  %v510_v63 = vcombine.low %v486_v18, %v502_v17  ;;  %v3744_v18 = vrot.slane %v479_v34, %v3444_v29 }
  0x99   : > { %v3691_v4 = vrot.slane %v511_v25, %v3660_v26  ;;  %v594_v25 = vcombine.low %v3697_v2, %v3694_v40  ;;  %v3748_v57 = vrot.slane %v510_v63, %v3660_v26  ;;  %v3767_v63 = vrot.slane %v333_v56, %v3660_v26 }
  0x9a   : > { %v699_v23 = vpop.permute.xlu1 %698  ;;  %v695_v24 = vpop.permute.xlu0 %694  ;;  %v526_v31 = vcombine.low %v3744_v18, %v3718_v58 }
  0x9b   : > { %v792_v43 = vcombine.low %v691_v51, %v699_v23  ;;  %v776_v44 = vcombine.low %v687_v22, %v695_v24  ;;  %v3011_v19 = vpack.i.bf16 %v3688_v3, %v3691_v4  ;;  %v777_v6 = vcombine.high %v687_v22, %v695_v24  ;;  %4967 = vst [vmem:[#allocation6_spill] sm:$0xff] %v3748_v57 }
  0x9c   : > { %4968 = vst [vmem:[#allocation7_spill] sm:$0xff] %v3767_v63  ;;  %v542_v56 = vcombine.high %v3748_v57, %v4948_v13 }
  0x9d   : > { %v800_v20 = vrot.slane %v792_v43, %v3444_v29  ;;  %v784_v52 = vrot.slane %v776_v44, %v3444_v29  ;;  %3012 = vrot.lane.b32.xlu0 %v3011_v19, %s3325_s26  ;;  %v348_v43 = vrot.slane %v334_v53, %v3660_v26  ;;  %v3725_v19 = vrot.slane %v594_v25, %v3660_v26 }
  0x9e   : > { %v3706_v21 = vpop.permute.xlu1 %688  ;;  %v3708_v5 = vpop.permute.xlu0 %684  ;;  %v3737_v53 = vrot.slane %v954_v55, %v3660_v26  ;;  %v3773_v24 = vrot.slane %v777_v6, %v3444_v29 }
  0x9f   : > { %v809_v0 = vcombine.high %v784_v52, %v800_v20  ;;  %v808_v25 = vcombine.low %v784_v52, %v800_v20  ;;  %v3781_v52 = vrot.slane %v266_v1, %v3660_v26  ;;  %v3021_v32 = vpack.i.bf16 %v3731_v33, %v3725_v19 }
  0xa0   : > { %4966 = vst [vmem:[#allocation5_spill] sm:$0xff] %v3737_v53  ;;  %v986_v22 = vcombine.high %v3737_v53, %v4948_v13  ;;  %4970 = vst [vmem:[#allocation9_spill] sm:$0xff] %v3773_v24  ;;  %v3815_v53 = vrot.slane %v526_v31, %v3660_v26  ;;  %v578_v31 = vcombine.low %v3663_v27, %v3666_v28 }
  0xa1   : > { %v3715_v44 = vrot.slane %v809_v0, %v3660_v26  ;;  %v793_v0 = vcombine.high %v691_v51, %v699_v23  ;;  %v3790_v34 = vrot.slane %v808_v25, %v3660_v26  ;;  %v4972_v25 = vcombine.low %v3510_v50, %v3500_v48 }
  0xa2   : > { %v3720_v30 = vpop.permute.xlu1 %696  ;;  %v3722_v38 = vpop.permute.xlu0 %692  ;;  %v4974_v28 = vcombine.high %v3484_v42, %v3481_v41 }
  0xa3   : > { %v724_v39 = vcombine.low %v3706_v21, %v3720_v30  ;;  %v708_v17 = vcombine.low %v3708_v5, %v3722_v38  ;;  %v3016_v54 = vpack.i.bf16 %v3715_v44, %v348_v43  ;;  %v3770_v23 = vrot.slane %v793_v0, %v3444_v29  ;;  %4971 = vst [vmem:[#allocation10_spill] sm:$0xff] %v3790_v34 }
  0xa4   : > { %v840_v57 = vcombine.high %v3790_v34, %v4948_v13 }
  0xa5   : > { %v3751_v47 = vrot.slane %v724_v39, %v3444_v29  ;;  %v3754_v49 = vrot.slane %v708_v17, %v3444_v29  ;;  %3017 = vrot.lane.b32.xlu1 %v3016_v54, %s3325_s26  ;;  %4969 = vst [vmem:[#allocation8_spill] sm:$0xff] %v3770_v23  ;;  %v824_v39 = vcombine.low %v3773_v24, %v3770_v23 }
  0xa6   : > { %v3757_v55 = vpop.permute.xlu1 %1372  ;;  %v3759_v51 = vpop.permute.xlu0 %1368  ;;  %v365_v17 = vcombine.high %v3767_v63, %v4948_v13  ;;  %v3808_v54 = vrot.slane %v4972_v25, %v3660_v26 }
  0xa7   : > { %v741_v20 = vcombine.high %v3754_v49, %v3751_v47  ;;  %v3838_v34 = vrot.slane %v824_v39, %v3660_v26  ;;  %v740_v41 = vcombine.low %v3754_v49, %v3751_v47 }
  0xa8   : > { %v3056_v23 = vpack.i.bf16 %v840_v57, %v365_v17  ;;  %v4975_v57 = vcombine.low %v3468_v36, %v3465_v35  ;;  %v841_v36 = vcombine.high %v3715_v44, %v4948_v13 }
  0xa9   : > { %v3793_v0 = vrot.slane %v741_v20, %v3660_v26  ;;  %3022 = vrot.lane.b32.xlu1 %v3021_v32, %s3326_s27  ;;  %v3051_v20 = vpack.i.bf16 %v986_v22, %v542_v56  ;;  %v1055_v22 = vcombine.high %v3674_v37, %v4948_v13  ;;  %v4973_v56 = vcombine.low %v3491_v45, %v3494_v46 }
  0xaa   : > { %v3796_v1 = vpop.permute.xlu1 %1380  ;;  %v3798_v6 = vpop.permute.xlu0 %1376  ;;  %v3031_v37 = vpack.i.bf16 %v3808_v54, %v3815_v53  ;;  %v3910_v46 = vrot.slane %v740_v41, %v3660_v26 }
  0xab   : > { %v3026_v32 = vpack.i.bf16 %v3793_v0, %v3781_v52  ;;  %v3829_v25 = vrot.slane %v4973_v56, %v3660_v26 }
  0xac   : > { %4981 = vst [vmem:[#allocation15_spill] sm:$0xff] %v3910_v46 }
  0xad   : > { %3052 = vrot.lane.b32.xlu1 %v3051_v20, %s3327_s28  ;;  %3027 = vrot.lane.b32.xlu0 %v3026_v32, %s3325_s26  ;;  %v595_v20 = vcombine.high %v3697_v2, %v3694_v40  ;;  %v611_v32 = vcombine.high %v3677_v15, %v4948_v13  ;;  %v366_v2 = vcombine.high %v348_v43, %v4948_v13 }
  0xae   : > { %v3819_v63 = vpop.permute.xlu1 %1824  ;;  %v3821_v24 = vpop.permute.xlu0 %1820  ;;  %v3853_v15 = vrot.slane %v4974_v28, %v3660_v26  ;;  %v3859_v40 = vrot.slane %v4975_v57, %v3660_v26  ;;  %v3036_v39 = vpack.i.bf16 %v3838_v34, %v3829_v25  ;;  %v3867_v43 = vrot.slane %v578_v31, %v3660_v26 }
  0xaf   : > { %v3864_v17 = vrot.slane %v595_v20, %v3660_v26  ;;  %v1474_v20 = vcombine.low %v3757_v55, %v3796_v1  ;;  %v1458_v31 = vcombine.low %v3759_v51, %v3798_v6  ;;  %v4979_v28 = vcombine.low %v3532_v60, %v3529_v59 }
  0xb0   : > { %4976 = vst [vmem:[#allocation11_spill] sm:$0xff] %v3859_v40  ;;  %4977 = vst [vmem:[#allocation12_spill] sm:$0xff] %v3867_v43  ;;  %v1054_v44 = vcombine.high %v3859_v40, %v4948_v13  ;;  %v3076_v40 = vpack.i.bf16 %v841_v36, %v366_v2 }
  0xb1   : > { %3057 = vrot.lane.b32.xlu1 %v3056_v23, %s3327_s28  ;;  %3032 = vrot.lane.b32.xlu0 %v3031_v37, %s3326_s27  ;;  %v3061_v23 = vpack.i.bf16 %v1055_v22, %v611_v32  ;;  %v1056_v22 = vcombine.high %v3731_v33, %v4948_v13  ;;  %v3041_v33 = vpack.i.bf16 %v3853_v15, %v3864_v17 }
  0xb2   : > { %v3844_v56 = vpop.permute.xlu1 %1832  ;;  %v3846_v27 = vpop.permute.xlu0 %1828  ;;  %v612_v32 = vcombine.high %v3725_v19, %v4948_v13  ;;  %v610_v37 = vcombine.high %v3867_v43, %v4948_v13  ;;  %v3901_v57 = vrot.slane %v4979_v28, %v3660_v26  ;;  %v3913_v19 = vrot.slane %v1474_v20, %v3444_v29 }
  0xb3   : > { %v1926_v42 = vcombine.low %v3819_v63, %v3844_v56  ;;  %v1910_v35 = vcombine.low %v3821_v24, %v3846_v27  ;;  %v3916_v13 = vrot.slane %v1458_v31, %v3444_v29 }
  0xb4   : > { %4980 = vst [vmem:[#allocation14_spill] sm:$0xff] %v3901_v57  ;;  %v3081_v41 = vpack.i.bf16 %v1056_v22, %v612_v32 }
  0xb5   : > { %3062 = vrot.lane.b32.xlu1 %v3061_v23, %s3328_s29  ;;  %3037 = vrot.lane.b32.xlu0 %v3036_v39, %s3326_s27  ;;  %v3904_v23 = vrot.slane %v1926_v42, %v3444_v29  ;;  %v3907_v39 = vrot.slane %v1910_v35, %v3444_v29  ;;  %v4982_v42 = vmov 0.0   ;;  %v3046_v35 = vpack.i.bf16 %v1054_v44, %v610_v37 }
  0xb6   : > { %v3885_v47 = vpop.permute.xlu1 %1370  ;;  %v3887_v49 = vpop.permute.xlu0 %1366  ;;  %v298_v2 = vcombine.high %v3781_v52, %v4982_v42  ;;  %v773_v36 = vcombine.high %v3793_v0, %v4982_v42  ;;  %v297_v20 = vcombine.high %v3901_v57, %v4982_v42  ;;  %v772_v52 = vcombine.high %v3910_v46, %v4982_v42 }
  0xb7   : > { %4978 = vst [vmem:[#allocation13_spill] sm:$0xff] %v3887_v49  ;;  %v1490_v22 = vcombine.low %v3916_v13, %v3913_v19  ;;  %v988_v32 = vcombine.high %v3808_v54, %v4982_v42  ;;  %v544_v28 = vcombine.high %v3815_v53, %v4982_v42  ;;  %v543_v57 = vcombine.high %v3691_v4, %v4982_v42 }
  0xb8   : > { %v3096_v37 = vpack.i.bf16 %v773_v36, %v298_v2  ;;  %v987_v46 = vcombine.high %v3688_v3, %v4982_v42  ;;  %v3066_v43 = vpack.i.bf16 %v772_v52, %v297_v20  ;;  %v725_v54 = vcombine.high %v3706_v21, %v3720_v30 }
  0xb9   : > { %3077 = vrot.lane.b32.xlu1 %v3076_v40, %s3328_s29  ;;  %3042 = vrot.lane.b32.xlu0 %v3041_v33, %s3329_s30  ;;  %v1942_v40 = vcombine.low %v3907_v39, %v3904_v23  ;;  %v709_v53 = vcombine.high %v3708_v5, %v3722_v38  ;;  %v3974_v2 = vrot.slane %v1490_v22, %v3660_v26 }
  0xba   : > { %v3920_v59 = vpop.permute.xlu1 %1378  ;;  %v3922_v60 = vpop.permute.xlu0 %1374  ;;  %v1688_v36 = vcombine.low %v3580_v7, %v3590_v9  ;;  %v3101_v30 = vpack.i.bf16 %v988_v32, %v544_v28  ;;  %v1943_v38 = vcombine.high %v3907_v39, %v3904_v23  ;;  %v3071_v20 = vpack.i.bf16 %v987_v46, %v543_v57 }
  0xbb   : > { %v1406_v31 = vcombine.low %v3885_v47, %v3920_v59  ;;  %v1390_v33 = vcombine.low %v3887_v49, %v3922_v60  ;;  %v3961_v49 = vrot.slane %v1942_v40, %v3660_v26  ;;  %4984 = vst [vmem:[#allocation17_spill] sm:$0xff] %v3974_v2  ;;  %v3996_v32 = vrot.slane %v709_v53, %v3444_v29 }
  0xbc   : > { %v1491_v23 = vcombine.high %v3916_v13, %v3913_v19  ;;  %v1522_v39 = vcombine.high %v3974_v2, %v4982_v42  ;;  %v4015_v13 = vrot.slane %v1688_v36, %v3444_v29 }
  0xbd   : > { %3082 = vrot.lane.b32.xlu1 %v3081_v41, %s3330_s6  ;;  %3047 = vrot.lane.b32.xlu0 %v3046_v35, %s3327_s28  ;;  %v3955_v41 = vrot.slane %v1406_v31, %v3444_v29  ;;  %v3958_v35 = vrot.slane %v1390_v33, %v3444_v29  ;;  %4983 = vst [vmem:[#allocation16_spill] sm:$0xff] %v3961_v49 }
  0xbe   : > { %v3942_v0 = vpop.permute.xlu1 %1822  ;;  %v3944_v44 = vpop.permute.xlu0 %1818  ;;  %v1974_v40 = vcombine.high %v3961_v49, %v4982_v42  ;;  %v1672_v31 = vcombine.low %v3583_v8, %v3593_v10  ;;  %v3991_v33 = vrot.slane %v725_v54, %v3444_v29  ;;  %v4009_v54 = vrot.slane %v1943_v38, %v3660_v26 }
  0xc0   : > { %v3086_v28 = vpack.i.bf16 %v1974_v40, %v1522_v39  ;;  %v4018_v19 = vrot.slane %v1672_v31, %v3444_v29  ;;  %v367_v40 = vcombine.high %v3829_v25, %v4982_v42 }
  0xc1   : > { %3097 = vrot.lane.b32.xlu1 %v3096_v37, %s3328_s29  ;;  %3067 = vrot.lane.b32.xlu0 %v3066_v43, %s3327_s28  ;;  %v1422_v43 = vcombine.low %v3958_v35, %v3955_v41 }
  0xc2   : > { %v3969_v4 = vpop.permute.xlu1 %1830  ;;  %v3971_v3 = vpop.permute.xlu0 %1826  ;;  %v1704_v49 = vcombine.low %v4018_v19, %v4015_v13 }
  0xc3   : > { %v1858_v21 = vcombine.low %v3942_v0, %v3969_v4  ;;  %v1842_v5 = vcombine.low %v3944_v44, %v3971_v3  ;;  %v4012_v53 = vrot.slane %v1422_v43, %v3660_v26  ;;  %v4031_v43 = vrot.slane %v1491_v23, %v3660_v26 }
  0xc4   : > { %v842_v23 = vcombine.high %v3838_v34, %v4982_v42 }
  0xc5   : > { %v1866_v52 = vrot.slane %v1858_v21, %v3444_v29  ;;  %v1850_v22 = vrot.slane %v1842_v5, %v3444_v29  ;;  %3102 = vrot.lane.b32.xlu1 %v3101_v30, %s3330_s6  ;;  %3072 = vrot.lane.b32.xlu0 %v3071_v20, %s3328_s29  ;;  %4986 = vst [vmem:[#allocation19_spill] sm:$0xff] %v4012_v53 }
  0xc6   : > { %v4002_v46 = vpop.permute.xlu1 %1142  ;;  %v4004_v57 = vpop.permute.xlu0 %1138  ;;  %v756_v5 = vcombine.low %v3996_v32, %v3991_v33  ;;  %v3091_v31 = vpack.i.bf16 %v4009_v54, %v4031_v43  ;;  %v1454_v39 = vcombine.high %v4012_v53, %v4982_v42 }
  0xc7   : > { %4985 = vst [vmem:[#allocation18_spill] sm:$0xff] %v4004_v57  ;;  %v1874_v37 = vcombine.low %v1850_v22, %v1866_v52 }
  0xc8   : > { %v764_v34 = vrot.slane %v756_v5, %v3660_v26 }
  0xc9   : > { %v4021_v21 = vrot.slane %v1874_v37, %v3660_v26  ;;  %3087 = vrot.lane.b32.xlu0 %v3086_v28, %s3327_s28  ;;  %v527_v28 = vcombine.high %v3744_v18, %v3718_v58  ;;  %v4989_v58 = vcombine.low %v3541_v62, %v3538_v61 }
  0xca   : > { %v4026_v30 = vpop.permute.xlu1 %1150  ;;  %v4028_v38 = vpop.permute.xlu0 %1146 }
  0xcb   : > { %4987 = vst [vmem:[#allocation20_spill] sm:$0xff] %v4021_v21  ;;  %4988 = vst [vmem:[#allocation21_spill] sm:$0xff] %v4028_v38  ;;  %v1244_v36 = vcombine.low %v4002_v46, %v4026_v30  ;;  %v1228_v20 = vcombine.low %v4004_v57, %v4028_v38  ;;  %v1906_v37 = vcombine.high %v4021_v21, %v4982_v42 }
  0xcc   : > { %v289_v18 = vrot.slane %v4989_v58, %v3660_v26  ;;  %v1875_v38 = vcombine.high %v1850_v22, %v1866_v52  ;;  %v1604_v58 = vcombine.low %v3611_v12, %v3621_v16  ;;  %v541_v5 = vrot.slane %v527_v28, %v3660_v26 }
  0xcd   : > { %v4050_v2 = vrot.slane %v1244_v36, %v3444_v29  ;;  %v4053_v25 = vrot.slane %v1228_v20, %v3444_v29  ;;  %3092 = vrot.lane.b32.xlu0 %v3091_v31, %s3325_s26  ;;  %v3106_v53 = vpack.i.bf16 %v1906_v37, %v1454_v39  ;;  %v1620_v36 = vcombine.low %v3608_v11, %v3618_v14 }
  0xce   : > { %v4058_v57 = vpop.permute.xlu1 %1140  ;;  %v4060_v21 = vpop.permute.xlu0 %1136  ;;  %v3116_v31 = vpack.i.bf16 %v842_v23, %v367_v40  ;;  %v613_v39 = vcombine.high %v3864_v17, %v4982_v42  ;;  %v1057_v37 = vcombine.high %v3853_v15, %v4982_v42  ;;  %v4990_v11 = vcombine.high %v3510_v50, %v3500_v48 }
  0xcf   : > { %v1260_v20 = vcombine.low %v4053_v25, %v4050_v2  ;;  %3107 = vrot.lane.b32.xlu1 %v3106_v53, %s3327_s28  ;;  %v4084_v52 = vrot.slane %v1704_v49, %v3660_v26  ;;  %v1423_v22 = vcombine.high %v3958_v35, %v3955_v41  ;;  %v3111_v17 = vpack.i.bf16 %v764_v34, %v289_v18 }
  0xd0   : > { %v985_v14 = vrot.slane %v4990_v11, %v3660_v26  ;;  %v3126_v11 = vpack.i.bf16 %v1057_v37, %v613_v39  ;;  %v1889_v49 = vrot.slane %v1875_v38, %v3660_v26  ;;  %v4103_v41 = vrot.slane %v1620_v36, %v3444_v29 }
  0xd1   : > { %3117 = vrot.lane.b32.xlu0 %v3116_v31, %s3330_s6  ;;  %v4094_v40 = vrot.slane %v1260_v20, %v3660_v26  ;;  %v4106_v35 = vrot.slane %v1604_v58, %v3444_v29  ;;  %v1736_v28 = vcombine.high %v4084_v52, %v4982_v42  ;;  %v1437_v38 = vrot.slane %v1423_v22, %v3660_v26 }
  0xd2   : > { %v4089_v15 = vpop.permute.xlu1 %1148  ;;  %v4091_v53 = vpop.permute.xlu0 %1144  ;;  %v3121_v23 = vpack.i.bf16 %v985_v14, %v541_v5  ;;  %v299_v39 = vcombine.high %v289_v18, %v4982_v42  ;;  %v774_v37 = vcombine.high %v764_v34, %v4982_v42  ;;  %v1927_v58 = vcombine.high %v3819_v63, %v3844_v56  ;;  %v4993_v34 = vld [vmem:[#allocation9_spill] sm:$0xff] }
  0xd3   : > { %4991 = vst [vmem:[#allocation22_spill] sm:$0xff] %v4094_v40  ;;  %v1176_v48 = vcombine.low %v4058_v57, %v4089_v15  ;;  %v1160_v50 = vcombine.low %v4060_v21, %v4091_v53  ;;  %3112 = vrot.lane.b32.xlu1 %v3111_v17, %s3326_s27  ;;  %v1292_v36 = vcombine.high %v4094_v40, %v4982_v42 }
  0xd4   : > { %v1911_v17 = vcombine.high %v3821_v24, %v3846_v27  ;;  %v1459_v22 = vcombine.high %v3759_v51, %v3798_v6  ;;  %v1636_v18 = vcombine.low %v4106_v35, %v4103_v41  ;;  %v1975_v56 = vcombine.high %v4009_v54, %v4982_v42 }
  0xd5   : > { %3127 = vrot.lane.b32.xlu0 %v3126_v11, %s3331_s7  ;;  %v4112_v20 = vrot.slane %v1176_v48, %v3444_v29  ;;  %v4115_v31 = vrot.slane %v1160_v50, %v3444_v29  ;;  %v3136_v48 = vpack.i.bf16 %v1889_v49, %v1437_v38  ;;  %v1475_v50 = vcombine.high %v3757_v55, %v3796_v1  ;;  %v4992_v11 = vld [vmem:[#allocation8_spill] sm:$0xff] }
  0xd6   : > { %v825_v40 = vcombine.high %v4993_v34, %v4992_v11  ;;  %v3131_v24 = vpack.i.bf16 %v1736_v28, %v1292_v36  ;;  %v3146_v27 = vpack.i.bf16 %v774_v37, %v299_v39  ;;  %v545_v55 = vcombine.high %v541_v5, %v4982_v42 }
  0xd7   : > { %3122 = vrot.lane.b32.xlu1 %v3121_v23, %s3329_s30  ;;  %v1192_v63 = vcombine.low %v4115_v31, %v4112_v20  ;;  %v989_v51 = vcombine.high %v985_v14, %v4982_v42  ;;  %v1705_v1 = vcombine.high %v4018_v19, %v4015_v13  ;;  %v4145_v6 = vrot.slane %v1927_v58, %v3444_v29  ;;  %v4994_v13 = vld [vmem:[#allocation2_spill] sm:$0xff] }
  0xd8   : > { %v4148_v23 = vrot.slane %v1911_v17, %v3444_v29  ;;  %v1261_v28 = vcombine.high %v4053_v25, %v4050_v2  ;;  %v1523_v54 = vcombine.high %v4031_v43, %v4982_v42  ;;  %v4156_v5 = vrot.slane %v1475_v50, %v3444_v29 }
  0xd9   : > { %3137 = vrot.lane.b32.xlu0 %v3136_v48, %s3325_s26  ;;  %v4159_v14 = vrot.slane %v1459_v22, %v3444_v29  ;;  %v4995_v19 = vcombine.high %v3491_v45, %v4994_v13  ;;  %v839_v2 = vrot.slane %v825_v40, %v3660_v26  ;;  %v4168_v25 = vrot.slane %v1192_v63, %v3660_v26 }
  0xda   : > { %v3141_v39 = vpack.i.bf16 %v1975_v56, %v1523_v54  ;;  %v4171_v43 = vrot.slane %v1636_v18, %v3660_v26  ;;  %v1958_v37 = vcombine.low %v4148_v23, %v4145_v6  ;;  %v3156_v58 = vpack.i.bf16 %v989_v51, %v545_v55 }
  0xdb   : > { %3132 = vrot.lane.b32.xlu1 %v3131_v24, %s3327_s28  ;;  %v364_v36 = vrot.slane %v4995_v19, %v3660_v26  ;;  %v1275_v45 = vrot.slane %v1261_v28, %v3660_v26  ;;  %v1719_v17 = vrot.slane %v1705_v1, %v3660_v26  ;;  %v1506_v48 = vcombine.low %v4159_v14, %v4156_v5 }
  0xdc   : > { %v1224_v50 = vcombine.high %v4168_v25, %v4982_v42  ;;  %v1668_v22 = vcombine.high %v4171_v43, %v4982_v42  ;;  %v1966_v11 = vrot.slane %v1958_v37, %v3660_v26  ;;  %v757_v34 = vcombine.high %v3996_v32, %v3991_v33  ;;  %v4996_v32 = vld [vmem:[#allocation13_spill] sm:$0xff] }
  0xdd   : > { %3147 = vrot.lane.b32.xlu0 %v3146_v27, %s3330_s6  ;;  %v3151_v40 = vpack.i.bf16 %v839_v2, %v364_v36  ;;  %v3166_v18 = vpack.i.bf16 %v1719_v17, %v1275_v45  ;;  %v1514_v63 = vrot.slane %v1506_v48, %v3660_v26  ;;  %v1859_v24 = vcombine.high %v3942_v0, %v3969_v4  ;;  %v4998_v37 = vld [vmem:[#allocation21_spill] sm:$0xff] }
  0xde   : > { %v1843_v56 = vcombine.high %v3944_v44, %v3971_v3  ;;  %v3161_v27 = vpack.i.bf16 %v1668_v22, %v1224_v50  ;;  %v1907_v55 = vcombine.high %v1889_v49, %v4982_v42  ;;  %v368_v51 = vcombine.high %v364_v36, %v4982_v42 }
  0xdf   : > { %3142 = vrot.lane.b32.xlu1 %v3141_v39, %s3328_s29  ;;  %v843_v1 = vcombine.high %v839_v2, %v4982_v42  ;;  %v1407_v33 = vcombine.high %v3885_v47, %v3920_v59  ;;  %v1391_v28 = vcombine.high %v4996_v32, %v3922_v60  ;;  %v3176_v0 = vpack.i.bf16 %v1966_v11, %v1514_v63 }
  0xe0   : > { %v1455_v44 = vcombine.high %v1437_v38, %v4982_v42  ;;  %v4997_v4 = vcombine.high %v3541_v62, %v3538_v61  ;;  %v771_v49 = vrot.slane %v757_v34, %v3660_v26  ;;  %v1637_v54 = vcombine.high %v4106_v35, %v4103_v41 }
  0xe1   : > { %3157 = vrot.lane.b32.xlu0 %v3156_v58, %s3331_s7  ;;  %v4212_v47 = vrot.slane %v1859_v24, %v3444_v29  ;;  %v4215_v59 = vrot.slane %v1843_v56, %v3444_v29  ;;  %v1193_v60 = vcombine.high %v4115_v31, %v4112_v20  ;;  %v1737_v61 = vcombine.high %v1719_v17, %v4982_v42  ;;  %v4999_v58 = vld [vmem:[#allocation18_spill] sm:$0xff] }
  0xe2   : > { %v296_v3 = vrot.slane %v4997_v4, %v3660_v26  ;;  %v3171_v38 = vpack.i.bf16 %v1907_v55, %v1455_v44  ;;  %v4222_v62 = vrot.slane %v1407_v33, %v3444_v29  ;;  %v4225_v13 = vrot.slane %v1391_v28, %v3444_v29  ;;  %v4294_v44 = vpop.permute.xlu0 %2050 }
  0xe3   : > { %3152 = vrot.lane.b32.xlu1 %v3151_v40, %s3329_s30  ;;  %v3186_v41 = vpack.i.bf16 %v843_v1, %v368_v51  ;;  %v1293_v35 = vcombine.high %v1275_v45, %v4982_v42  ;;  %v1689_v19 = vcombine.high %v3580_v7, %v3590_v9  ;;  %v1673_v20 = vcombine.high %v3583_v8, %v3593_v10  ;;  %v5000_v7 = vld [vmem:[#allocation4_spill] sm:$0xff]  ;;  %v5001_v9 = vld [vmem:[#allocation3_spill] sm:$0xff]  ;;  %v4287_v1 = vpop.permute.xlu1 %2054 }
  0xe4   : > { %v3181_v31 = vpack.i.bf16 %v771_v49, %v296_v3  ;;  %v1651_v36 = vrot.slane %v1637_v54, %v3660_v26  ;;  %v1890_v39 = vcombine.low %v4215_v59, %v4212_v47  ;;  %v1245_v2 = vcombine.high %v4002_v46, %v4026_v30 }
  0xe5   : > { %3167 = vrot.lane.b32.xlu0 %v3166_v18, %s3325_s26  ;;  %v1229_v17 = vcombine.high %v4999_v58, %v4998_v37  ;;  %v1207_v45 = vrot.slane %v1193_v60, %v3660_v26  ;;  %v1621_v48 = vcombine.high %v5001_v9, %v5000_v7  ;;  %v1605_v8 = vcombine.high %v3611_v12, %v3621_v16 }
  0xe6   : > { %v1976_v10 = vcombine.high %v1966_v11, %v4982_v42  ;;  %v1438_v40 = vcombine.low %v4225_v13, %v4222_v62  ;;  %v1177_v46 = vcombine.high %v4058_v57, %v4089_v15  ;;  %v1161_v30 = vcombine.high %v4060_v21, %v4091_v53 }
  0xe7   : > { %3162 = vrot.lane.b32.xlu1 %v3161_v27, %s3327_s28  ;;  %v3196_v50 = vpack.i.bf16 %v1737_v61, %v1293_v35  ;;  %v4255_v22 = vrot.slane %v1689_v19, %v3444_v29  ;;  %v4258_v18 = vrot.slane %v1673_v20, %v3444_v29  ;;  %v1524_v12 = vcombine.high %v1514_v63, %v4982_v42  ;;  %v4310_v20 = vpop.permute.xlu1 %2062 }
  0xe8   : > { %v4262_v16 = vrot.slane %v1245_v2, %v3444_v29  ;;  %v4265_v11 = vrot.slane %v1229_v17, %v3444_v29  ;;  %v3191_v57 = vpack.i.bf16 %v1651_v36, %v1207_v45  ;;  %v1898_v21 = vrot.slane %v1890_v39, %v3660_v26  ;;  %v4319_v2 = vpop.permute.xlu0 %2058 }
  0xe9   : > { %3177 = vrot.lane.b32.xlu0 %v3176_v0, %s3326_s27  ;;  %v4270_v15 = vrot.slane %v1621_v48, %v3444_v29  ;;  %v4273_v53 = vrot.slane %v1605_v8, %v3444_v29  ;;  %v3206_v34 = vpack.i.bf16 %v1976_v10, %v1524_v12  ;;  %v1669_v63 = vcombine.high %v1651_v36, %v4982_v42 }
  0xea   : > { %v4277_v24 = vrot.slane %v1177_v46, %v3444_v29  ;;  %v4280_v56 = vrot.slane %v1161_v30, %v3444_v29  ;;  %v1446_v27 = vrot.slane %v1438_v40, %v3660_v26  ;;  %v1225_v55 = vcombine.high %v1207_v45, %v4982_v42 }
  0xeb   : > { %3172 = vrot.lane.b32.xlu1 %v3171_v38, %s3328_s29  ;;  %v1720_v51 = vcombine.low %v4258_v18, %v4255_v22  ;;  %v1276_v33 = vcombine.low %v4265_v11, %v4262_v16  ;;  %v300_v28 = vcombine.high %v296_v3, %v4982_v42  ;;  %v775_v0 = vcombine.high %v771_v49, %v4982_v42  ;;  %v4327_v17 = vpop.permute.xlu1 %2052 }
  0xec   : > { %v3201_v32 = vpack.i.bf16 %v1898_v21, %v1446_v27  ;;  %v1208_v4 = vcombine.low %v4280_v56, %v4277_v24  ;;  %v3216_v54 = vpack.i.bf16 %v1669_v63, %v1225_v55  ;;  %v1908_v60 = vcombine.high %v1898_v21, %v4982_v42  ;;  %v4332_v7 = vpop.permute.xlu0 %2048 }
  0xed   : > { %3187 = vrot.lane.b32.xlu0 %v3186_v41, %s3331_s7  ;;  %v1652_v38 = vcombine.low %v4273_v53, %v4270_v15  ;;  %v1728_v61 = vrot.slane %v1720_v51, %v3660_v26  ;;  %v1959_v3 = vcombine.high %v4148_v23, %v4145_v6  ;;  %v3211_v49 = vpack.i.bf16 %v775_v0, %v300_v28 }
  0xee   : > { %v1456_v41 = vcombine.high %v1446_v27, %v4982_v42  ;;  %v1284_v35 = vrot.slane %v1276_v33, %v3660_v26  ;;  %v1891_v19 = vcombine.high %v4215_v59, %v4212_v47  ;;  %v1216_v6 = vrot.slane %v1208_v4, %v3660_v26 }
  0xef   : > { %3182 = vrot.lane.b32.xlu1 %v3181_v31, %s3329_s30  ;;  %v1507_v31 = vcombine.high %v4159_v14, %v4156_v5  ;;  %v1660_v23 = vrot.slane %v1652_v38, %v3660_v26  ;;  %v1439_v39 = vcombine.high %v4225_v13, %v4222_v62  ;;  %v1973_v59 = vrot.slane %v1959_v3, %v3660_v26 }
  0xf0   : > { %v3226_v36 = vpack.i.bf16 %v1908_v60, %v1456_v41  ;;  %v3221_v47 = vpack.i.bf16 %v1728_v61, %v1284_v35  ;;  %v1905_v37 = vrot.slane %v1891_v19, %v3660_v26  ;;  %v1294_v13 = vcombine.high %v1284_v35, %v4982_v42  ;;  %v2057_v27 = vpop.permute.xlu0 %2056 }
  0xf1   : > { %3197 = vrot.lane.b32.xlu0 %v3196_v50, %s3328_s29  ;;  %v3236_v5 = vpack.i.bf16 %v1660_v23, %v1216_v6  ;;  %v1521_v14 = vrot.slane %v1507_v31, %v3660_v26  ;;  %v1453_v58 = vrot.slane %v1439_v39, %v3660_v26  ;;  %v1738_v45 = vcombine.high %v1728_v61, %v4982_v42 }
  0xf2   : > { %v1670_v9 = vcombine.high %v1660_v23, %v4982_v42  ;;  %v1721_v8 = vcombine.high %v4258_v18, %v4255_v22  ;;  %v1277_v10 = vcombine.high %v4265_v11, %v4262_v16  ;;  %v2140_v40 = vcombine.low %v4294_v44, %v4319_v2  ;;  %v2061_v16 = vpop.permute.xlu1 %2060 }
  0xf3   : > { %3192 = vrot.lane.b32.xlu1 %v3191_v57, %s3325_s26  ;;  %v3231_v62 = vpack.i.bf16 %v1973_v59, %v1521_v14  ;;  %v3246_v48 = vpack.i.bf16 %v1905_v37, %v1453_v58  ;;  %v1226_v46 = vcombine.high %v1216_v6, %v4982_v42  ;;  %v2156_v30 = vcombine.low %v4287_v1, %v4310_v20 }
  0xf4   : > { %v1977_v50 = vcombine.high %v1973_v59, %v4982_v42  ;;  %v3241_v12 = vpack.i.bf16 %v1738_v45, %v1294_v13  ;;  %v1909_v22 = vcombine.high %v1905_v37, %v4982_v42  ;;  %v1525_v18 = vcombine.high %v1521_v14, %v4982_v42 }
  0xf5   : > { %3207 = vrot.lane.b32.xlu0 %v3206_v34, %s3330_s6  ;;  %v1735_v11 = vrot.slane %v1721_v8, %v3660_v26  ;;  %v2148_v57 = vrot.slane %v2140_v40, %v3444_v29  ;;  %v2164_v21 = vrot.slane %v2156_v30, %v3444_v29  ;;  %v3256_v34 = vpack.i.bf16 %v1670_v9, %v1226_v46 }
  0xf6   : > { %v1291_v63 = vrot.slane %v1277_v10, %v3660_v26  ;;  %v3251_v55 = vpack.i.bf16 %v1977_v50, %v1525_v18  ;;  %v1653_v51 = vcombine.high %v4273_v53, %v4270_v15  ;;  %v1209_v33 = vcombine.high %v4280_v56, %v4277_v24 }
  0xf7   : > { %3202 = vrot.lane.b32.xlu1 %v3201_v32, %s3326_s27  ;;  %v2072_v32 = vcombine.low %v4332_v7, %v2057_v27  ;;  %v1457_v28 = vcombine.high %v1453_v58, %v4982_v42  ;;  %v2088_v0 = vcombine.low %v4327_v17, %v2061_v16  ;;  %v2172_v4 = vcombine.low %v2148_v57, %v2164_v21 }
  0xf8   : > { %v1295_v60 = vcombine.high %v1291_v63, %v4982_v42  ;;  %v1739_v38 = vcombine.high %v1735_v11, %v4982_v42  ;;  %v1667_v15 = vrot.slane %v1653_v51, %v3660_v26  ;;  %v3261_v56 = vpack.i.bf16 %v1735_v11, %v1291_v63 }
  0xf9   : > { %3217 = vrot.lane.b32.xlu0 %v3216_v54, %s3328_s29  ;;  %v3266_v54 = vpack.i.bf16 %v1909_v22, %v1457_v28  ;;  %v2080_v53 = vrot.slane %v2072_v32, %v3444_v29  ;;  %v2096_v24 = vrot.slane %v2088_v0, %v3444_v29  ;;  %v1223_v61 = vrot.slane %v1209_v33, %v3660_v26 }
  0xfa   : > { %v4371_v3 = vrot.slane %v2172_v4, %v3660_v26  ;;  %v1671_v31 = vcombine.high %v1667_v15, %v4982_v42  ;;  %v2157_v6 = vcombine.high %v4287_v1, %v4310_v20  ;;  %v2173_v23 = vcombine.high %v2148_v57, %v2164_v21  ;;  %v5003_v57 = vld [vmem:[#allocation6_spill] sm:$0xff] }
  0xfb   : > { %3212 = vrot.lane.b32.xlu1 %v3211_v49, %s3331_s7  ;;  %v3276_v49 = vpack.i.bf16 %v1739_v38, %v1295_v60  ;;  %v2104_v41 = vcombine.low %v2080_v53, %v2096_v24  ;;  %v3271_v35 = vpack.i.bf16 %v1667_v15, %v1223_v61  ;;  %v1227_v19 = vcombine.high %v1223_v61, %v4982_v42 }
  0xfc   : > { %v2204_v39 = vcombine.high %v4371_v3, %v4982_v42  ;;  %v2187_v1 = vrot.slane %v2173_v23, %v3660_v26  ;;  %v2073_v20 = vcombine.high %v4332_v7, %v2057_v27  ;;  %v2089_v14 = vcombine.high %v4327_v17, %v2061_v16  ;;  %v5002_v16 = vld [vmem:[#allocation5_spill] sm:$0xff] }
  0xfd   : > { %3227 = vrot.lane.b32.xlu0 %v3226_v36, %s3330_s6  ;;  %v2141_v36 = vcombine.high %v4294_v44, %v4319_v2  ;;  %v3281_v59 = vpack.i.bf16 %v1671_v31, %v1227_v19  ;;  %v2105_v58 = vcombine.high %v2080_v53, %v2096_v24 }
  0xfe   : > { %v2087_v8 = vrot.slane %v2073_v20, %v3444_v29  ;;  %v2103_v7 = vrot.slane %v2089_v14, %v3444_v29 }
  0xff   : > { %3222 = vrot.lane.b32.xlu1 %v3221_v47, %s3326_s27  ;;  %v4385_v47 = vrot.slane %v2104_v41, %v3660_v26  ;;  %v2155_v37 = vrot.slane %v2141_v36, %v3444_v29  ;;  %v2119_v17 = vrot.slane %v2105_v58, %v3660_v26 }
 0x101   : > { %3237 = vrot.lane.b32.xlu0 %v3236_v5, %s3326_s27  ;;  %v2171_v5 = vrot.slane %v2157_v6, %v3444_v29  ;;  %v2137_v29 = vcombine.high %v2119_v17, %v4982_v42 }
 0x103   : > { %3232 = vrot.lane.b32.xlu1 %v3231_v62, %s3329_s30  ;;  %v2136_v62 = vcombine.high %v4385_v47, %v4982_v42  ;;  %v2188_v13 = vcombine.low %v2155_v37, %v2171_v5 }
 0x105   : > { %3247 = vrot.lane.b32.xlu0 %v3246_v48, %s3329_s30  ;;  %v2205_v48 = vcombine.high %v2187_v1, %v4982_v42  ;;  %v2196_v46 = vrot.slane %v2188_v13, %v3660_v26 }
 0x107   : > { %3242 = vrot.lane.b32.xlu1 %v3241_v12, %s3330_s6  ;;  %v4390_v44 = vpop.permute.xlu0 %3007  ;;  %v2120_v12 = vcombine.low %v2087_v8, %v2103_v7 }
 0x109   : > { %3257 = vrot.lane.b32.xlu0 %v3256_v34, %s3330_s6  ;;  %v2189_v34 = vcombine.high %v2155_v37, %v2171_v5  ;;  %v2128_v32 = vrot.slane %v2120_v12, %v3660_v26  ;;  %v3010_v12 = vunpack.i.h.bf16 %v4390_v44 }
 0x10b   : > { %3252 = vrot.lane.b32.xlu1 %v3251_v55, %s3331_s7  ;;  %v2206_v55 = vcombine.high %v2196_v46, %v4982_v42  ;;  %v2203_v4 = vrot.slane %v2189_v34, %v3660_v26  ;;  %v2138_v60 = vcombine.high %v2128_v32, %v4982_v42 }
 0x10d   : > { %3267 = vrot.lane.b32.xlu0 %v3266_v54, %s3331_s7  ;;  %v2121_v54 = vcombine.high %v2087_v8, %v2103_v7  ;;  %v2207_v53 = vcombine.high %v2203_v4, %v4982_v42 }
 0x10f   : > { %3262 = vrot.lane.b32.xlu1 %v3261_v56, %s3329_s30  ;;  %v3013_v45 = vpop.permute.xlu0 %3012  ;;  %v2135_v24 = vrot.slane %v2121_v54, %v3660_v26  ;;  %v5006_v54 = vld [vmem:[#allocation10_spill] sm:$0xff] }
 0x110   : > { %v3015_v22 = vunpack.i.h.bf16 %v3013_v45  ;;  %v3014_v18 = vunpack.i.l.bf16 %v3013_v45 }
 0x111   : > { %3277 = vrot.lane.b32.xlu0 %v3276_v49, %s3331_s7  ;;  %v2139_v49 = vcombine.high %v2135_v24, %v4982_v42 }
 0x113   : > { %3272 = vrot.lane.b32.xlu1 %v3271_v35, %s3329_s30 }
 0x115   : > { %2237 = vrot.lane.b32.xlu0 %v2204_v39, %s3327_s28 }
 0x117   : > { %v4392_v2 = vpop.permute.xlu1 %3017  ;;  %3282 = vrot.lane.b32.xlu1 %v3281_v59, %s3331_s7 }
 0x119   : > { %2241 = vrot.lane.b32.xlu0 %v2187_v1, %s3325_s26 }
 0x11b   : > { %v4401_v9 = vpop.permute.xlu1 %3022  ;;  %2209 = vrot.lane.b32.xlu1 %v2136_v62, %s3327_s28 }
 0x11d   : > { %2245 = vrot.lane.b32.xlu0 %v2205_v48, %s3328_s29 }
 0x11f   : > { %v3053_v10 = vpop.permute.xlu1 %3052  ;;  %v4409_v40 = vpop.permute.xlu0 %3027  ;;  %2213 = vrot.lane.b32.xlu1 %v2119_v17, %s3325_s26 }
 0x120   : > { %v3055_v30 = vunpack.i.h.bf16 %v3053_v10  ;;  %v3054_v50 = vunpack.i.l.bf16 %v3053_v10  ;;  %v5004_v10 = vld [vmem:[#allocation11_spill] sm:$0xff] }
 0x121   : > { %2249 = vrot.lane.b32.xlu0 %v2196_v46, %s3326_s27 }
 0x122   : > { %v1114_v11 = vsel %vm425_vm0, %v5002_v16, %v3055_v30  ;;  %v670_v21 = vsel %vm425_vm0, %v5003_v57, %v3054_v50  ;;  %v5005_v30 = vld [vmem:[#allocation12_spill] sm:$0xff] }
 0x123   : > { %v4419_v63 = vpop.permute.xlu1 %3057  ;;  %v3033_v27 = vpop.permute.xlu0 %3032  ;;  %2217 = vrot.lane.b32.xlu1 %v2137_v29, %s3328_s29  ;;  %v671_v51 = vsel %vm427_vm1, %v670_v21, %v3014_v18  ;;  %v1115_v33 = vsel %vm427_vm1, %v1114_v11, %v3015_v22  ;;  %v3009_v22 = vunpack.i.l.bf16 %v4390_v44 }
 0x124   : > { %v3035_v6 = vunpack.i.h.bf16 %v3033_v27  ;;  %v3034_v23 = vunpack.i.l.bf16 %v3033_v27  ;;  %v3060_v57 = vunpack.i.h.bf16 %v4419_v63  ;;  %v3059_v21 = vunpack.i.l.bf16 %v4419_v63 }
 0x125   : > { %2253 = vrot.lane.b32.xlu0 %v2206_v55, %s3330_s6 }
 0x127   : > { %v3063_v28 = vpop.permute.xlu1 %3062  ;;  %v4427_v0 = vpop.permute.xlu0 %3037  ;;  %2221 = vrot.lane.b32.xlu1 %v2128_v32, %s3326_s27  ;;  %v3024_v32 = vunpack.i.l.bf16 %v4401_v9 }
 0x128   : > { %v3065_v34 = vunpack.i.h.bf16 %v3063_v28  ;;  %v3064_v27 = vunpack.i.l.bf16 %v3063_v28  ;;  %v3020_v28 = vunpack.i.h.bf16 %v4392_v2 }
 0x129   : > { %2257 = vrot.lane.b32.xlu0 %v2203_v4, %s3329_s30 }
 0x12b   : > { %v4433_v38 = vpop.permute.xlu1 %3077  ;;  %v4435_v15 = vpop.permute.xlu0 %3042  ;;  %2225 = vrot.lane.b32.xlu1 %v2138_v60, %s3330_s6  ;;  %v907_v60 = vsel %vm425_vm0, %v5006_v54, %v3060_v57 }
 0x12d   : > { %2261 = vrot.lane.b32.xlu0 %v2207_v53, %s3331_s7  ;;  %v5007_v53 = vld [vmem:[#allocation7_spill] sm:$0xff] }
 0x12e   : > { %v439_v63 = vsel %vm425_vm0, %v5007_v53, %v3059_v21 }
 0x12f   : > { %v3048_v56 = vpop.permute.xlu0 %3047  ;;  %2229 = vrot.lane.b32.xlu1 %v2135_v24, %s3329_s30  ;;  %v4442_v61 = vpop.permute.xlu1 %3082  ;;  %v3019_v24 = vunpack.i.l.bf16 %v4392_v2 }
 0x130   : > { %v3050_v48 = vunpack.i.h.bf16 %v3048_v56  ;;  %v3049_v8 = vunpack.i.l.bf16 %v3048_v56 }
 0x131   : > { %v440_v2 = vsel %vm427_vm1, %v439_v63, %v3019_v24 }
 0x132   : > { %v1121_v46 = vsel %vm425_vm0, %v5004_v10, %v3050_v48  ;;  %v677_v50 = vsel %vm425_vm0, %v5005_v30, %v3049_v8  ;;  %v3044_v30 = vunpack.i.l.bf16 %v4435_v15 }
 0x133   : > { %2233 = vrot.lane.b32.xlu1 %v2139_v49, %s3331_s7  ;;  %v4446_v41 = vpop.permute.xlu0 %3067  ;;  %v4448_v35 = vpop.permute.xlu1 %3097  ;;  %v1122_v29 = vsel %vm427_vm1, %v1121_v46, %v3010_v12  ;;  %v678_v16 = vsel %vm427_vm1, %v677_v50, %v3009_v22 }
 0x134   : > { %v679_v44 = vsel %vm429_vm2, %v678_v16, %v3064_v27  ;;  %v3069_v50 = vunpack.i.l.bf16 %v4446_v41 }
 0x135   : > { %v680_v49 = vsel %vm431_vm3, %v679_v44, %v3024_v32  ;;  %v5008_v32 = vld [vmem:[#allocation15_spill] sm:$0xff] }
 0x137   : > { %v3073_v19 = vpop.permute.xlu0 %3072  ;;  %v4460_v1 = vpop.permute.xlu1 %3102 }
 0x138   : > { %v3075_v31 = vunpack.i.h.bf16 %v3073_v19  ;;  %v3074_v36 = vunpack.i.l.bf16 %v3073_v19  ;;  %v3080_v19 = vunpack.i.h.bf16 %v4433_v38 }
 0x13a   : > { %v1116_v26 = vsel %vm429_vm2, %v1115_v33, %v3075_v31  ;;  %v672_v39 = vsel %vm429_vm2, %v671_v51, %v3074_v36  ;;  %v1123_v51 = vsel %vm429_vm2, %v1122_v29, %v3065_v34  ;;  %v3025_v33 = vunpack.i.h.bf16 %v4401_v9 }
 0x13b   : > { %v4452_v59 = vpop.permute.xlu0 %3087  ;;  %v4455_v37 = vsel %vm431_vm3, %v1116_v26, %v3035_v6  ;;  %v4458_v5 = vsel %vm431_vm3, %v672_v39, %v3034_v23  ;;  %v3079_v31 = vunpack.i.l.bf16 %v4433_v38  ;;  %v3085_v36 = vunpack.i.h.bf16 %v4442_v61 }
 0x13c   : > { %v1124_v9 = vsel %vm431_vm3, %v1123_v51, %v3025_v33  ;;  %v3084_v6 = vunpack.i.l.bf16 %v4442_v61  ;;  %v3040_v23 = vunpack.i.h.bf16 %v4427_v0  ;;  %v3039_v26 = vunpack.i.l.bf16 %v4427_v0 }
 0x13d   : > { %v908_v39 = vsel %vm427_vm1, %v907_v60, %v3020_v28  ;;  %v1125_v46 = vsel %vm433_vm4, %v1124_v9, %v3085_v36  ;;  %v3045_v61 = vunpack.i.h.bf16 %v4435_v15  ;;  %v3070_v0 = vunpack.i.h.bf16 %v4446_v41 }
 0x13e   : > { %v681_v38 = vsel %vm433_vm4, %v680_v49, %v3084_v6  ;;  %v441_v22 = vsel %vm429_vm2, %v440_v2, %v3079_v31  ;;  %v909_v29 = vsel %vm429_vm2, %v908_v39, %v3080_v19  ;;  %v3030_v41 = vunpack.i.h.bf16 %v4409_v40 }
 0x13f   : > { %v4462_v20 = vpop.permute.xlu0 %3092  ;;  %v682_v15 = vsel %vm435_vm5, %v681_v38, %v3044_v30  ;;  %v1126_v27 = vsel %vm435_vm5, %v1125_v46, %v3045_v61  ;;  %v3029_v51 = vunpack.i.l.bf16 %v4409_v40  ;;  %v900_v54 = vsel %vm425_vm0, %v5008_v32, %v3070_v0  ;;  %v5010_v32 = vld [vmem:[#allocation16_spill] sm:$0xff] }
 0x140   : > { %v442_v60 = vsel %vm431_vm3, %v441_v22, %v3039_v26  ;;  %v910_v53 = vsel %vm431_vm3, %v909_v29, %v3040_v23  ;;  %v901_v23 = vsel %vm427_vm1, %v900_v54, %v3030_v41  ;;  %v3100_v46 = vunpack.i.h.bf16 %v4448_v35  ;;  %v5011_v54 = vld [vmem:[#allocation17_spill] sm:$0xff] }
 0x141   : > { %v4464_v14 = vpop.permute.xlu1 %3107  ;;  %v3099_v61 = vunpack.i.l.bf16 %v4448_v35  ;;  %v3105_v30 = vunpack.i.h.bf16 %v4460_v1  ;;  %v3104_v0 = vunpack.i.l.bf16 %v4460_v1  ;;  %v3089_v22 = vunpack.i.l.bf16 %v4452_v59 }
 0x142   : > { %v3110_v41 = vunpack.i.h.bf16 %v4464_v14 }
 0x143   : > { %v4466_v58 = vpop.permute.xlu0 %3117  ;;  %v674_v1 = vsel %vm433_vm4, %v4458_v5, %v3104_v0  ;;  %v1589_v5 = vsel %vm425_vm0, %v5011_v54, %v3089_v22 }
 0x144   : > { %v3119_v16 = vunpack.i.l.bf16 %v4466_v58 }
 0x145   : > { %v4468_v62 = vpop.permute.xlu1 %3112 }
 0x146   : > { %v443_v24 = vsel %vm433_vm4, %v442_v60, %v3119_v16  ;;  %v3094_v16 = vunpack.i.l.bf16 %v4462_v20 }
 0x147   : > { %v4470_v13 = vpop.permute.xlu0 %3127 }
 0x148   : > { %v3130_v8 = vunpack.i.h.bf16 %v4470_v13  ;;  %v3129_v10 = vunpack.i.l.bf16 %v4470_v13  ;;  %v3120_v13 = vunpack.i.h.bf16 %v4466_v58  ;;  %v5009_v58 = vld [vmem:[#allocation14_spill] sm:$0xff]  ;;  %v1590_v60 = vsel %vm427_vm1, %v1589_v5, %v3094_v16 }
 0x149   : > { %v4472_v45 = vpop.permute.xlu1 %3122 }
 0x14a   : > { %v683_v44 = vsel %vm437_vm6, %v682_v15, %v3129_v10  ;;  %v1127_v33 = vsel %vm437_vm6, %v1126_v27, %v3130_v8  ;;  %v911_v28 = vsel %vm433_vm4, %v910_v53, %v3120_v13  ;;  %v3125_v15 = vunpack.i.h.bf16 %v4472_v45 }
 0x14b   : > { %v4474_v7 = vpop.permute.xlu0 %3137  ;;  %v2281_v36 = vrot.slane %v683_v44, 4  ;;  %v2287_v6 = vrot.slane %v1127_v33, 4  ;;  %v3124_v35 = vunpack.i.l.bf16 %v4472_v45  ;;  %v1118_v27 = vsel %vm433_vm4, %v4455_v37, %v3105_v30 }
 0x14c   : > { %v3115_v37 = vunpack.i.h.bf16 %v4468_v62  ;;  %v3109_v53 = vunpack.i.l.bf16 %v4464_v14 }
 0x14d   : > { %v4476_v17 = vpop.permute.xlu1 %3132 }
 0x14e   : > { %v3134_v22 = vunpack.i.l.bf16 %v4476_v17 }
 0x14f   : > { %v4484_v18 = vpop.permute.xlu0 %3147 }
 0x151   : > { %v4488_v11 = vpop.permute.xlu1 %3142 }
 0x153   : > { %v4492_v55 = vpop.permute.xlu0 %3157 }
 0x154   : > { %v3160_v44 = vunpack.i.h.bf16 %v4492_v55  ;;  %v3159_v33 = vunpack.i.l.bf16 %v4492_v55  ;;  %v3149_v55 = vunpack.i.l.bf16 %v4484_v18 }
 0x155   : > { %v3153_v4 = vpop.permute.xlu1 %3152 }
 0x156   : > { %v3155_v57 = vunpack.i.h.bf16 %v3153_v4  ;;  %v3154_v21 = vunpack.i.l.bf16 %v3153_v4  ;;  %v426_v4 = vsel %vm425_vm0, %v5009_v58, %v3069_v50  ;;  %v3090_v50 = vunpack.i.h.bf16 %v4452_v59 }
 0x157   : > { %v4504_v56 = vpop.permute.xlu0 %3167  ;;  %v428_v39 = vsel %vm427_vm1, %v426_v4, %v3029_v51  ;;  %v3114_v51 = vunpack.i.l.bf16 %v4468_v62  ;;  %v3095_v58 = vunpack.i.h.bf16 %v4462_v20  ;;  %v5012_v62 = vld [vmem:[#allocation20_spill] sm:$0xff] }
 0x158   : > { %v444_v19 = vsel %vm435_vm5, %v443_v24, %v3154_v21  ;;  %v912_v31 = vsel %vm435_vm5, %v911_v28, %v3155_v57  ;;  %v430_v57 = vsel %vm429_vm2, %v428_v39, %v3099_v61  ;;  %v902_v21 = vsel %vm429_vm2, %v901_v23, %v3100_v46 }
 0x159   : > { %v4516_v48 = vpop.permute.xlu1 %3162  ;;  %v2041_v45 = vsel %vm425_vm0, %v5010_v32, %v3090_v50  ;;  %v675_v28 = vsel %vm435_vm5, %v674_v1, %v3124_v35  ;;  %v1119_v24 = vsel %vm435_vm5, %v1118_v27, %v3125_v15  ;;  %v3145_v15 = vunpack.i.h.bf16 %v4488_v11 }
 0x15a   : > { %v676_v14 = vsel %vm437_vm6, %v675_v28, %v3159_v33  ;;  %v3169_v32 = vunpack.i.l.bf16 %v4504_v56 }
 0x15b   : > { %v4526_v12 = vpop.permute.xlu0 %3177  ;;  %v2280_v46 = vrot.slane %v676_v14, 4 }
 0x15c   : > { %v3180_v28 = vunpack.i.h.bf16 %v4526_v12 }
 0x15d   : > { %v4532_v34 = vpop.permute.xlu1 %3172 }
 0x15f   : > { %v3188_v63 = vpop.permute.xlu0 %3187 }
 0x160   : > { %v3190_v40 = vunpack.i.h.bf16 %v3188_v63  ;;  %v3189_v49 = vunpack.i.l.bf16 %v3188_v63  ;;  %v3150_v63 = vunpack.i.h.bf16 %v4484_v18  ;;  %v903_v18 = vsel %vm431_vm3, %v902_v21, %v3115_v37  ;;  %v5014_v37 = vld [vmem:[#allocation22_spill] sm:$0xff] }
 0x161   : > { %v4548_v9 = vpop.permute.xlu1 %3182 }
 0x162   : > { %v445_v2 = vsel %vm437_vm6, %v444_v19, %v3189_v49  ;;  %v913_v26 = vsel %vm437_vm6, %v912_v31, %v3190_v40  ;;  %v3185_v40 = vunpack.i.h.bf16 %v4548_v9  ;;  %v3184_v20 = vunpack.i.l.bf16 %v4548_v9 }
 0x163   : > { %v4556_v8 = vpop.permute.xlu0 %3197  ;;  %v2304_v10 = vsel %vm2302_vm7, %v445_v2, %v2281_v36  ;;  %v2306_v38 = vsel %vm2302_vm7, %v913_v26, %v2287_v6  ;;  %v2034_v19 = vsel %vm425_vm0, %v5012_v62, %v3110_v41  ;;  %v432_v31 = vsel %vm431_vm3, %v430_v57, %v3114_v51  ;;  %v5013_v57 = vld [vmem:[#allocation19_spill] sm:$0xff] }
 0x164   : > { %v2936_v13 = vpack.c.bf16 %v2306_v38, %v2304_v10  ;;  %v1120_v36 = vsel %vm437_vm6, %v1119_v24, %v3160_v44  ;;  %v3140_v6 = vunpack.i.h.bf16 %v4474_v7  ;;  %v3139_v2 = vunpack.i.l.bf16 %v4474_v7 }
 0x165   : > { %v4566_v29 = vpop.permute.xlu1 %3192  ;;  %v3135_v26 = vunpack.i.h.bf16 %v4476_v17  ;;  %v434_v23 = vsel %vm433_vm4, %v432_v31, %v3149_v55  ;;  %v904_v39 = vsel %vm433_vm4, %v903_v18, %v3150_v63  ;;  %v2286_v61 = vrot.slane %v1120_v36, 4 }
 0x166   : > { %2937 = vmatprep.subr.bf16.mxu0 %v2936_v13  ;;  %v436_v30 = vsel %vm435_vm5, %v434_v23, %v3184_v20  ;;  %v905_v0 = vsel %vm435_vm5, %v904_v39, %v3185_v40  ;;  %v3144_v7 = vunpack.i.l.bf16 %v4488_v11  ;;  %v1582_v21 = vsel %vm425_vm0, %v5013_v57, %v3109_v53 }
 0x167   : > { %v4577_v59 = vpop.permute.xlu0 %3207  ;;  %v2042_v41 = vsel %vm427_vm1, %v2041_v45, %v3095_v58  ;;  %v2035_v17 = vsel %vm427_vm1, %v2034_v19, %v3140_v6  ;;  %v1583_v51 = vsel %vm427_vm1, %v1582_v21, %v3139_v2  ;;  %v3170_v44 = vunpack.i.h.bf16 %v4504_v56  ;;  %v2332_v56 = vld [vmem:[%s4936_s2 + $0x8] sm:$0xff]  ;;  %v2335_v21 = vld [vmem:[%s4936_s2 + $0x20] sm:$0xff] }
 0x168   : > { %v1803_v33 = vsel %vm425_vm0, %v4084_v52, %v3135_v26  ;;  %v3165_v11 = vunpack.i.h.bf16 %v4516_v48  ;;  %v1359_v53 = vsel %vm425_vm0, %v5014_v37, %v3134_v22  ;;  %v1591_v45 = vsel %vm429_vm2, %v1590_v60, %v3144_v7  ;;  %v2331_v52 = vld [vmem:[%s4936_s2] sm:$0xff] }
 0x169   : > { %v4589_v4 = vpop.permute.xlu1 %3202  ;;  %v3164_v58 = vunpack.i.l.bf16 %v4516_v48  ;;  %v3179_v63 = vunpack.i.l.bf16 %v4526_v12  ;;  %v2043_v55 = vsel %vm429_vm2, %v2042_v41, %v3145_v15  ;;  %v3174_v24 = vunpack.i.l.bf16 %v4532_v34 }
 0x16a   : > { %v1804_v48 = vsel %vm427_vm1, %v1803_v33, %v3170_v44  ;;  %v3175_v40 = vunpack.i.h.bf16 %v4532_v34  ;;  %v3200_v20 = vunpack.i.h.bf16 %v4556_v8  ;;  %v3199_v62 = vunpack.i.l.bf16 %v4556_v8 }
 0x16b   : > { %v4599_v49 = vpop.permute.xlu0 %3217  ;;  %v3332_v19 = vmov 0   ;;  %v1360_v31 = vsel %vm427_vm1, %v1359_v53, %v3169_v32  ;;  %v1796_v12 = vsel %vm425_vm0, %v4171_v43, %v3165_v11  ;;  %v3195_v14 = vunpack.i.h.bf16 %v4566_v29  ;;  %v2333_v43 = vld [vmem:[%s4936_s2 + $0x10] sm:$0xff] }
 0x16c   : > { %3286 = vset.pattern.permute.xlu0 %v3332_v19  ;;  %3287 = vset.pattern.permute.xlu1 %v3332_v19  ;;  %v3194_v36 = vunpack.i.l.bf16 %v4566_v29  ;;  %v1352_v34 = vsel %vm425_vm0, %v4168_v25, %v3164_v58  ;;  %v1592_v8 = vsel %vm431_vm3, %v1591_v45, %v3179_v63  ;;  %v3210_v6 = vunpack.i.h.bf16 %v4577_v59  ;;  %v2334_v29 = vld [vmem:[%s4936_s2 + $0x18] sm:$0xff] }
 0x16d   : > { %v3213_v9 = vpop.permute.xlu1 %3212  ;;  %2353 = vperm.xlu0 %3286, %v2331_v52   ;;  %2358 = vperm.xlu1 %3287, %v2332_v56   ;;  %v3209_v2 = vunpack.i.l.bf16 %v4577_v59  ;;  %v2044_v26 = vsel %vm431_vm3, %v2043_v55, %v3180_v28  ;;  %v3205_v25 = vunpack.i.h.bf16 %v4589_v4  ;;  %v3204_v23 = vunpack.i.l.bf16 %v4589_v4  ;;  %v2338_v56 = vld [vmem:[%s4936_s2 + $0x38] sm:$0xff] }
 0x16e   : > { %v3215_v10 = vunpack.i.h.bf16 %v3213_v9  ;;  %v3214_v38 = vunpack.i.l.bf16 %v3213_v9  ;;  %v1584_v9 = vsel %vm429_vm2, %v1583_v51, %v3174_v24  ;;  %v1361_v59 = vsel %vm429_vm2, %v1360_v31, %v3199_v62 }
 0x16f   : > { %v4614_v50 = vpop.permute.xlu0 %3227  ;;  %v1593_v4 = vsel %vm433_vm4, %v1592_v8, %v3209_v2  ;;  %v1585_v15 = vsel %vm431_vm3, %v1584_v9, %v3204_v23  ;;  %v2339_v2 = vld [vmem:[%s4936_s2 + $0x40] sm:$0xff] }
 0x170   : > { %v438_v13 = vsel %vm437_vm6, %v436_v30, %v3214_v38  ;;  %v906_v16 = vsel %vm437_vm6, %v905_v0, %v3215_v10  ;;  %v2036_v10 = vsel %vm429_vm2, %v2035_v17, %v3175_v40  ;;  %v1805_v38 = vsel %vm429_vm2, %v1804_v48, %v3200_v20 }
 0x171   : > { %v4623_v35 = vpop.permute.xlu1 %3222  ;;  %v2303_v1 = vsel %vm2302_vm7, %v438_v13, %v2280_v46  ;;  %v2305_v27 = vsel %vm2302_vm7, %v906_v16, %v2286_v61  ;;  %v3220_v46 = vunpack.i.h.bf16 %v4599_v49  ;;  %v4684_v61 = vsel %vm427_vm1, %v1352_v34, %v3194_v36  ;;  %2363 = vperm.xlu1 %3287, %v2333_v43   ;;  %2368 = vperm.xlu0 %3286, %v2334_v29   ;;  %v2340_v43 = vld [vmem:[%s4936_s2 + $0x48] sm:$0xff] }
 0x172   : > { %v2938_v5 = vpack.c.bf16 %v2305_v27, %v2303_v1  ;;  %v1797_v30 = vsel %vm427_vm1, %v1796_v12, %v3195_v14  ;;  %v3230_v0 = vunpack.i.h.bf16 %v4614_v50  ;;  %v3229_v22 = vunpack.i.l.bf16 %v4614_v50  ;;  %v2336_v50 = vld [vmem:[%s4936_s2 + $0x28] sm:$0xff] }
 0x173   : > { %v4635_v54 = vpop.permute.xlu0 %3237  ;;  %v2045_v13 = vsel %vm433_vm4, %v2044_v26, %v3210_v6  ;;  %v3225_v16 = vunpack.i.h.bf16 %v4623_v35  ;;  %v3224_v57 = vunpack.i.l.bf16 %v4623_v35  ;;  %v2037_v1 = vsel %vm431_vm3, %v2036_v10, %v3205_v25 }
 0x174   : > { %2939 = vmatpush1.bf16.msra.mxu0 %v2938_v5  ;;  %v4706_v51 = vsel %vm429_vm2, %v1797_v30, %v3220_v46  ;;  %v3219_v35 = vunpack.i.l.bf16 %v4599_v49  ;;  %v1586_v32 = vsel %vm433_vm4, %v1585_v15, %v3229_v22  ;;  %v2038_v11 = vsel %vm433_vm4, %v2037_v1, %v3230_v0  ;;  %v2337_v49 = vld [vmem:[%s4936_s2 + $0x30] sm:$0xff] }
 0x175   : > { %v4651_v60 = vpop.permute.xlu1 %3232  ;;  %2373 = vperm.xlu1 %3287, %v2335_v21   ;;  %2378 = vperm.xlu0 %3286, %v2336_v50   ;;  %v1362_v45 = vsel %vm431_vm3, %v1361_v59, %v3224_v57  ;;  %v1806_v58 = vsel %vm431_vm3, %v1805_v38, %v3225_v16  ;;  %v3240_v63 = vunpack.i.h.bf16 %v4635_v54  ;;  %v3239_v52 = vunpack.i.l.bf16 %v4635_v54  ;;  %v2341_v21 = vld [vmem:[%s4936_s2 + $0x50] sm:$0xff]  ;;  %v2342_v50 = vld [vmem:[%s4936_s2 + $0x58] sm:$0xff] }
 0x176   : > { %v3235_v27 = vunpack.i.h.bf16 %v4651_v60  ;;  %v3234_v41 = vunpack.i.l.bf16 %v4651_v60 }
 0x177   : > { %v4662_v18 = vpop.permute.xlu0 %3247  ;;  %v1799_v1 = vsel %vm431_vm3, %v4706_v51, %v3240_v63 }
 0x178   : > { %v1594_v55 = vsel %vm435_vm5, %v1593_v4, %v3234_v41  ;;  %v2046_v28 = vsel %vm435_vm5, %v2045_v13, %v3235_v27  ;;  %v3250_v24 = vunpack.i.h.bf16 %v4662_v18  ;;  %v3249_v60 = vunpack.i.l.bf16 %v4662_v18 }
 0x179   : > { %v3243_v39 = vpop.permute.xlu1 %3242  ;;  %2383 = vperm.xlu1 %3287, %v2337_v49   ;;  %2388 = vperm.xlu0 %3286, %v2338_v56   ;;  %v1354_v13 = vsel %vm429_vm2, %v4684_v61, %v3219_v35 }
 0x17a   : > { %v3245_v5 = vunpack.i.h.bf16 %v3243_v39  ;;  %v3244_v37 = vunpack.i.l.bf16 %v3243_v39  ;;  %v1587_v29 = vsel %vm435_vm5, %v1586_v32, %v3249_v60  ;;  %v2039_v26 = vsel %vm435_vm5, %v2038_v11, %v3250_v24 }
 0x17b   : > { %v4689_v7 = vpop.permute.xlu0 %3257  ;;  %v1355_v15 = vsel %vm431_vm3, %v1354_v13, %v3239_v52  ;;  %v2315_v13 = vld [vmem:[%s4935_s1 + $0x20] sm:$0xff] }
 0x17c   : > { %v1363_v19 = vsel %vm433_vm4, %v1362_v45, %v3244_v37  ;;  %v1807_v31 = vsel %vm433_vm4, %v1806_v58, %v3245_v5  ;;  %v3260_v39 = vunpack.i.h.bf16 %v4689_v7  ;;  %v3259_v10 = vunpack.i.l.bf16 %v4689_v7  ;;  %v2344_v45 = vld [vmem:[%s4936_s2 + $0x68] sm:$0xff] }
 0x17d   : > { %v3253_v17 = vpop.permute.xlu1 %3252  ;;  %2393 = vperm.xlu1 %3287, %v2339_v2   ;;  %2398 = vperm.xlu0 %3286, %v2340_v43  }
 0x17e   : > { %v3255_v44 = vunpack.i.h.bf16 %v3253_v17  ;;  %v3254_v33 = vunpack.i.l.bf16 %v3253_v17  ;;  %v1356_v61 = vsel %vm433_vm4, %v1355_v15, %v3259_v10  ;;  %v1800_v41 = vsel %vm433_vm4, %v1799_v1, %v3260_v39  ;;  %v2321_v15 = vld [vmem:[%s4935_s1 + $0x50] sm:$0xff]  ;;  %v2322_v1 = vld [vmem:[%s4935_s1 + $0x58] sm:$0xff] }
 0x17f   : > { %v3268_v53 = vpop.permute.xlu0 %3267 }
 0x180   : > { %v1595_v40 = vsel %vm437_vm6, %v1594_v55, %v3254_v33  ;;  %v2047_v54 = vsel %vm437_vm6, %v2046_v28, %v3255_v44  ;;  %v3270_v12 = vunpack.i.h.bf16 %v3268_v53  ;;  %v3269_v14 = vunpack.i.l.bf16 %v3268_v53  ;;  %v2343_v53 = vld [vmem:[%s4936_s2 + $0x60] sm:$0xff]  ;;  %v2345_v55 = vld [vmem:[%s4936_s2 + $0x70] sm:$0xff]  ;;  %v2346_v28 = vld [vmem:[%s4936_s2 + $0x78] sm:$0xff] }
 0x181   : > { %v3263_v48 = vpop.permute.xlu1 %3262  ;;  %v2293_v9 = vrot.slane %v1595_v40, 4  ;;  %v2299_v25 = vrot.slane %v2047_v54, 4  ;;  %2403 = vperm.xlu1 %3287, %v2341_v21   ;;  %2408 = vperm.xlu0 %3286, %v2342_v50   ;;  %v2348_v40 = vld [vmem:[%s4936_s2 + $0x88] sm:$0xff]  ;;  %v2319_v21 = vld [vmem:[%s4935_s1 + $0x40] sm:$0xff] }
 0x182   : > { %v3265_v20 = vunpack.i.h.bf16 %v3263_v48  ;;  %v3264_v62 = vunpack.i.l.bf16 %v3263_v48  ;;  %v1588_v16 = vsel %vm437_vm6, %v1587_v29, %v3269_v14  ;;  %v2040_v7 = vsel %vm437_vm6, %v2039_v26, %v3270_v12  ;;  %v2347_v48 = vld [vmem:[%s4936_s2 + $0x80] sm:$0xff]  ;;  %v2320_v50 = vld [vmem:[%s4935_s1 + $0x48] sm:$0xff] }
 0x183   : > { %v3278_v36 = vpop.permute.xlu0 %3277  ;;  %v2292_v44 = vrot.slane %v1588_v16, 4  ;;  %v2298_v33 = vrot.slane %v2040_v7, 4  ;;  %v2316_v16 = vld [vmem:[%s4935_s1 + $0x28] sm:$0xff]  ;;  %v2317_v7 = vld [vmem:[%s4935_s1 + $0x30] sm:$0xff] }
 0x184   : > { %v1364_v34 = vsel %vm435_vm5, %v1363_v19, %v3264_v62  ;;  %v1808_v18 = vsel %vm435_vm5, %v1807_v31, %v3265_v20  ;;  %v3280_v8 = vunpack.i.h.bf16 %v3278_v36  ;;  %v3279_v6 = vunpack.i.l.bf16 %v3278_v36  ;;  %v2349_v62 = vld [vmem:[%s4936_s2 + $0x90] sm:$0xff]  ;;  %v2350_v19 = vld [vmem:[%s4936_s2 + $0x98] sm:$0xff] }
 0x185   : > { %v3273_v23 = vpop.permute.xlu1 %3272  ;;  %2413 = vperm.xlu1 %3287, %v2343_v53   ;;  %2418 = vperm.xlu0 %3286, %v2344_v45  }
 0x186   : > { %v1365_v59 = vsel %vm437_vm6, %v1364_v34, %v3279_v6  ;;  %v1809_v38 = vsel %vm437_vm6, %v1808_v18, %v3280_v8  ;;  %v3275_v46 = vunpack.i.h.bf16 %v3273_v23  ;;  %v3274_v30 = vunpack.i.l.bf16 %v3273_v23  ;;  %v2747_v18 = vld [vmem:[%s4938_s4] sm:$0xff]  ;;  %v2748_v8 = vld [vmem:[%s4938_s4 + $0x8] sm:$0x7] }
 0x187   : > { %v2238_v0 = vpop.permute.xlu0 %2237  ;;  %v2308_v22 = vsel %vm2302_vm7, %v1365_v59, %v2293_v9  ;;  %v2310_v4 = vsel %vm2302_vm7, %v1809_v38, %v2299_v25 }
 0x188   : > { %v2940_v57 = vpack.c.bf16 %v2310_v4, %v2308_v22  ;;  %v1357_v32 = vsel %vm435_vm5, %v1356_v61, %v3274_v30  ;;  %v1801_v11 = vsel %vm435_vm5, %v1800_v41, %v3275_v46  ;;  %v2271_v12 = vsel %vm425_vm0, %v4371_v3, %v2238_v0  ;;  %v2312_v0 = vld [vmem:[%s4935_s1 + $0x8] sm:$0xff]  ;;  %v2313_v22 = vld [vmem:[%s4935_s1 + $0x10] sm:$0xff]  ;;  %v2314_v4 = vld [vmem:[%s4935_s1 + $0x18] sm:$0xff] }
 0x189   : > { %v3283_v27 = vpop.permute.xlu1 %3282  ;;  %2423 = vperm.xlu1 %3287, %v2345_v55   ;;  %2428 = vperm.xlu0 %3286, %v2346_v28   ;;  %v2324_v61 = vld [vmem:[%s4935_s1 + $0x68] sm:$0xff]  ;;  %v2325_v41 = vld [vmem:[%s4935_s1 + $0x70] sm:$0xff] }
 0x18a   : > { %v3285_v17 = vunpack.i.h.bf16 %v3283_v27  ;;  %v3284_v35 = vunpack.i.l.bf16 %v3283_v27  ;;  %2941 = vmatprep.subr.bf16.mxu0 %v2940_v57  ;;  %v2318_v57 = vld [vmem:[%s4935_s1 + $0x38] sm:$0xff]  ;;  %v2323_v27 = vld [vmem:[%s4935_s1 + $0x60] sm:$0xff] }
 0x18b   : > { %v2242_v5 = vpop.permute.xlu0 %2241 }
 0x18c   : > { %v1358_v37 = vsel %vm437_vm6, %v1357_v32, %v3284_v35  ;;  %v1802_v51 = vsel %vm437_vm6, %v1801_v11, %v3285_v17  ;;  %v2272_v14 = vsel %vm427_vm1, %v2271_v12, %v2242_v5  ;;  %v2326_v17 = vld [vmem:[%s4935_s1 + $0x78] sm:$0xff]  ;;  %v2327_v35 = vld [vmem:[%s4935_s1 + $0x80] sm:$0xff]  ;;  %v2744_v11 = vld [vmem:[%s4937_s3 + $0x8] sm:$0xff] }
 0x18d   : > { %v2210_v58 = vpop.permute.xlu1 %2209  ;;  %v2307_v63 = vsel %vm2302_vm7, %v1358_v37, %v2292_v44  ;;  %v2309_v52 = vsel %vm2302_vm7, %v1802_v51, %v2298_v33  ;;  %2433 = vperm.xlu1 %3287, %v2347_v48   ;;  %2438 = vperm.xlu0 %3286, %v2348_v40   ;;  %v2328_v44 = vld [vmem:[%s4935_s1 + $0x88] sm:$0xff]  ;;  %v2329_v33 = vld [vmem:[%s4935_s1 + $0x90] sm:$0xff]  ;;  %v2330_v32 = vld [vmem:[%s4935_s1 + $0x98] sm:$0xff] }
 0x18e   : > { %v2942_v49 = vpack.c.bf16 %v2309_v52, %v2307_v63  ;;  %v2264_v26 = vsel %vm425_vm0, %v4385_v47, %v2210_v58  ;;  %v2311_v47 = vld [vmem:[%s4935_s1] sm:$0xff]  ;;  %2931 = vmatprep.mubr.msk.f32.mxu1 %vm427_vm1, %v2744_v11 }
 0x18f   : > { %v2246_v56 = vpop.permute.xlu0 %2245 }
 0x190   : > { %2943 = vmatpush1.bf16.msra.mxu0 %v2942_v49  ;;  %v2273_v34 = vsel %vm429_vm2, %v2272_v14, %v2246_v56 }
 0x191   : > { %v2214_v24 = vpop.permute.xlu1 %2213  ;;  %2443 = vperm.xlu1 %3287, %v2349_v62   ;;  %2448 = vperm.xlu0 %3286, %v2350_v19  }
 0x192   : > { %v2265_v25 = vsel %vm427_vm1, %v2264_v26, %v2214_v24 }
 0x193   : > { %v2250_v60 = vpop.permute.xlu0 %2249 }
 0x194   : > { %v2274_v6 = vsel %vm431_vm3, %v2273_v34, %v2250_v60 }
 0x195   : > { %v2218_v54 = vpop.permute.xlu1 %2217  ;;  %2751 = vperm.xlu1 %3287, %v2747_v18   ;;  %2756 = vperm.xlu0 %3286, %v2748_v8  }
 0x196   : > { %v2266_v39 = vsel %vm429_vm2, %v2265_v25, %v2218_v54 }
 0x197   : > { %v2254_v20 = vpop.permute.xlu0 %2253 }
 0x198   : > { %v2275_v3 = vsel %vm433_vm4, %v2274_v6, %v2254_v20 }
 0x199   : > { %v2222_v31 = vpop.permute.xlu1 %2221 }
 0x19a   : > { %v2267_v10 = vsel %vm431_vm3, %v2266_v39, %v2222_v31 }
 0x19b   : > { %v2258_v36 = vpop.permute.xlu0 %2257 }
 0x19c   : > { %v2276_v43 = vsel %vm435_vm5, %v2275_v3, %v2258_v36 }
 0x19d   : > { %v2226_v2 = vpop.permute.xlu1 %2225 }
 0x19e   : > { %v2268_v59 = vsel %vm433_vm4, %v2267_v10, %v2226_v2 }
 0x19f   : > { %v2262_v29 = vpop.permute.xlu0 %2261 }
 0x1a0   : > { %v2277_v9 = vsel %vm437_vm6, %v2276_v43, %v2262_v29 }
 0x1a1   : > { %v2230_v23 = vpop.permute.xlu1 %2229  ;;  %2909 = vmatprep.subr.msk.mxu0 %vm2302_vm7, %v2277_v9 }
 0x1a2   : > { %v2269_v38 = vsel %vm435_vm5, %v2268_v59, %v2230_v23 }
 0x1a5   : > { %v2234_v46 = vpop.permute.xlu1 %2233 }
 0x1a6   : > { %v2270_v30 = vsel %vm437_vm6, %v2269_v38, %v2234_v46 }
 0x1a7   : > { %2910 = vmatpush1.msk.msra.mxu0 %vm2302_vm7, %v2270_v30 }
 0x1a8   : > { %2911 = vmatmul.mubr.msk.f32.vlgmr.msra.gmra.mrb[0].mxu0 %vm2451_vm8, %v2311_v47 }
 0x1a9   : > { %2588 = vmatprep.mubr.f32.mxu0 %v4982_v42 }
 0x1ac   : > { %2912 = vmatmul.mubr.msk.f32.gmra.mrb[2].mxu0 %vm2451_vm8, %v2312_v0 }
 0x1ad   : > { %2594 = vmatprep.mubr.f32.mxu0 %v4982_v42 }
 0x1b0   : > { %2913 = vmatmul.mubr.msk.f32.gmra.mrb[4].mxu0 %vm2451_vm8, %v2313_v22 }
 0x1b1   : > { %2600 = vmatprep.mubr.f32.mxu0 %v4982_v42 }
 0x1b4   : > { %2914 = vmatmul.mubr.msk.f32.gmra.mrb[6].mxu0 %vm2451_vm8, %v2314_v4 }
 0x1b5   : > { %2606 = vmatprep.mubr.f32.mxu0 %v4982_v42 }
 0x1b8   : > { %2915 = vmatmul.mubr.msk.f32.gmra.mrb[8].mxu0 %vm2451_vm8, %v2315_v13 }
 0x1b9   : > { %2612 = vmatprep.mubr.f32.mxu0 %v4982_v42 }
 0x1bc   : > { %2916 = vmatmul.mubr.msk.f32.gmra.mrb[10].mxu0 %vm2451_vm8, %v2316_v16 }
 0x1bd   : > { %2618 = vmatprep.mubr.f32.mxu0 %v4982_v42 }
 0x1c0   : > { %2917 = vmatmul.mubr.msk.f32.gmra.mrb[12].mxu0 %vm2451_vm8, %v2317_v7 }
 0x1c1   : > { %2624 = vmatprep.mubr.f32.mxu0 %v4982_v42 }
 0x1c4   : > { %2918 = vmatmul.mubr.msk.f32.gmra.mrb[14].mxu0 %vm2451_vm8, %v2318_v57 }
 0x1c5   : > { %2630 = vmatprep.mubr.f32.mxu0 %v4982_v42 }
 0x1c8   : > { %2919 = vmatmul.mubr.msk.f32.gmra.mrb[16].mxu0 %vm2451_vm8, %v2319_v21 }
 0x1c9   : > { %2636 = vmatprep.mubr.f32.mxu0 %v4982_v42 }
 0x1cc   : > { %2920 = vmatmul.mubr.msk.f32.gmra.mrb[18].mxu0 %vm2451_vm8, %v2320_v50 }
 0x1cd   : > { %2642 = vmatprep.mubr.f32.mxu0 %v4982_v42 }
 0x1d0   : > { %2921 = vmatmul.mubr.msk.f32.gmra.mrb[20].mxu0 %vm2451_vm8, %v2321_v15 }
 0x1d1   : > { %2648 = vmatprep.mubr.f32.mxu0 %v4982_v42 }
 0x1d4   : > { %2922 = vmatmul.mubr.msk.f32.gmra.mrb[22].mxu0 %vm2451_vm8, %v2322_v1 }
 0x1d5   : > { %2654 = vmatprep.mubr.f32.mxu0 %v4982_v42 }
 0x1d8   : > { %2923 = vmatmul.mubr.msk.f32.gmra.mrb[24].mxu0 %vm2451_vm8, %v2323_v27 }
 0x1d9   : > { %2660 = vmatprep.mubr.f32.mxu0 %v4982_v42 }
 0x1dc   : > { %2924 = vmatmul.mubr.msk.f32.gmra.mrb[26].mxu0 %vm2451_vm8, %v2324_v61 }
 0x1dd   : > { %2666 = vmatprep.mubr.f32.mxu0 %v4982_v42 }
 0x1e0   : > { %2925 = vmatmul.mubr.msk.f32.gmra.mrb[28].mxu0 %vm2451_vm8, %v2325_v41 }
 0x1e1   : > { %2672 = vmatprep.mubr.f32.mxu0 %v4982_v42 }
 0x1e4   : > { %2926 = vmatmul.mubr.msk.f32.gmra.mrb[30].mxu0 %vm2451_vm8, %v2326_v17 }
 0x1e5   : > { %2678 = vmatprep.mubr.f32.mxu0 %v4982_v42 }
 0x1e8   : > { %2927 = vmatmul.mubr.msk.f32.gmra.mrb[32].mxu0 %vm2451_vm8, %v2327_v35 }
 0x1e9   : > { %2684 = vmatprep.mubr.f32.mxu0 %v4982_v42 }
 0x1ec   : > { %2928 = vmatmul.mubr.msk.f32.gmra.mrb[34].mxu0 %vm2451_vm8, %v2328_v44  ;;  %v2354_v5 = vpop.permute.xlu0 %2353  ;;  %v2359_v45 = vpop.permute.xlu1 %2358 }
 0x1ed   : > { %2690 = vmatprep.mubr.f32.mxu0 %v4982_v42 }
 0x1f0   : > { %2929 = vmatmul.mubr.msk.f32.gmra.mrb[36].mxu0 %vm2451_vm8, %v2329_v33  ;;  %v2364_v54 = vpop.permute.xlu1 %2363  ;;  %v2369_v19 = vpop.permute.xlu0 %2368 }
 0x1f1   : > { %2696 = vmatprep.mubr.f32.mxu0 %v4982_v42 }
 0x1f4   : > { %2930 = vmatmul.mubr.msk.f32.gmra.mrb[38].mxu0 %vm2451_vm8, %v2330_v32  ;;  %v2374_v26 = vpop.permute.xlu1 %2373  ;;  %v2379_v23 = vpop.permute.xlu0 %2378 }
 0x1f8   : > { %v2384_v7 = vpop.permute.xlu1 %2383  ;;  %v2389_v50 = vpop.permute.xlu0 %2388 }
 0x27b   : > { %v2584_v37 = vpop.f32.mrb[0].mxu0 }
 0x27c   : > { %v2586_v51 = vpop.f32.mrb[1].mxu0  ;;  %v2585_v53 = vadd.f32 %v2584_v37, %v2354_v5  ;;  %v2394_v37 = vpop.permute.xlu1 %2393 }
 0x27d   : > { %v2587_v58 = vadd.f32 %v2586_v51, %v2354_v5 }
 0x27e   : > { %v2703_v56 = vmax.f32 %v2585_v53, 0.0 }
 0x27f   : > { %v2590_v63 = vpop.f32.mrb[2].mxu0  ;;  %v2704_v28 = vmax.f32 %v2587_v58, 0.0 }
 0x280   : > { %v2591_v42 = vadd.f32 %v2590_v63, %v2359_v45  ;;  %v2592_v52 = vpop.f32.mrb[3].mxu0 }
 0x281   : > { %v2593_v49 = vadd.f32 %v2592_v52, %v2359_v45  ;;  %v2399_v45 = vpop.permute.xlu0 %2398 }
 0x282   : > { %v2705_v55 = vmax.f32 %v2591_v42, 0.0 }
 0x283   : > { %v2706_v24 = vmax.f32 %v2593_v49, 0.0  ;;  %v2596_v60 = vpop.f32.mrb[4].mxu0 }
 0x284   : > { %v2598_v48 = vpop.f32.mrb[5].mxu0  ;;  %v2946_v40 = vpack.c.bf16 %v2705_v55, %v2703_v56  ;;  %v2597_v62 = vadd.f32 %v2596_v60, %v2364_v54 }
 0x285   : > { %v2944_v20 = vpack.c.bf16 %v2706_v24, %v2704_v28  ;;  %v2599_v31 = vadd.f32 %v2598_v48, %v2364_v54  ;;  %v2404_v54 = vpop.permute.xlu1 %2403 }
 0x286   : > { %v2707_v18 = vmax.f32 %v2597_v62, 0.0 }
 0x287   : > { %v2602_v12 = vpop.f32.mrb[6].mxu0  ;;  %2945 = vmatprep.subr.bf16.mxu1 %v2944_v20  ;;  %v2708_v6 = vmax.f32 %v2599_v31, 0.0 }
 0x288   : > { %v2603_v14 = vadd.f32 %v2602_v12, %v2369_v19  ;;  %v2604_v36 = vpop.f32.mrb[7].mxu0  ;;  %2947 = vmatpush1.bf16.msra.mxu1 %v2946_v40 }
 0x289   : > { %v2605_v34 = vadd.f32 %v2604_v36, %v2369_v19  ;;  %v2409_v19 = vpop.permute.xlu0 %2408 }
 0x28a   : > { %v2709_v8 = vmax.f32 %v2603_v14, 0.0 }
 0x28b   : > { %v2710_v2 = vmax.f32 %v2605_v34, 0.0  ;;  %v2608_v3 = vpop.f32.mrb[8].mxu0 }
 0x28c   : > { %v2950_v43 = vpack.c.bf16 %v2709_v8, %v2707_v18  ;;  %v2610_v29 = vpop.f32.mrb[9].mxu0  ;;  %v2609_v25 = vadd.f32 %v2608_v3, %v2374_v26 }
 0x28d   : > { %v2948_v9 = vpack.c.bf16 %v2710_v2, %v2708_v6  ;;  %v2611_v39 = vadd.f32 %v2610_v29, %v2374_v26  ;;  %v2414_v26 = vpop.permute.xlu1 %2413 }
 0x28e   : > { %v2711_v47 = vmax.f32 %v2609_v25, 0.0 }
 0x28f   : > { %v2614_v10 = vpop.f32.mrb[10].mxu0  ;;  %2949 = vmatprep.subr.bf16.mxu1 %v2948_v9  ;;  %v2712_v0 = vmax.f32 %v2611_v39, 0.0 }
 0x290   : > { %v2615_v59 = vadd.f32 %v2614_v10, %v2379_v23  ;;  %v2616_v38 = vpop.f32.mrb[11].mxu0  ;;  %2951 = vmatpush1.bf16.msra.mxu1 %v2950_v43 }
 0x291   : > { %v2617_v46 = vadd.f32 %v2616_v38, %v2379_v23  ;;  %v2419_v23 = vpop.permute.xlu0 %2418 }
 0x292   : > { %v2713_v30 = vmax.f32 %v2615_v59, 0.0 }
 0x293   : > { %v2714_v22 = vmax.f32 %v2617_v46, 0.0  ;;  %v2620_v4 = vpop.f32.mrb[12].mxu0 }
 0x294   : > { %v2954_v13 = vpack.c.bf16 %v2713_v30, %v2711_v47  ;;  %v2622_v16 = vpop.f32.mrb[13].mxu0  ;;  %v2621_v21 = vadd.f32 %v2620_v4, %v2384_v7 }
 0x295   : > { %v2952_v57 = vpack.c.bf16 %v2714_v22, %v2712_v0  ;;  %v2623_v15 = vadd.f32 %v2622_v16, %v2384_v7  ;;  %v2424_v7 = vpop.permute.xlu1 %2423 }
 0x296   : > { %v2715_v17 = vmax.f32 %v2621_v21, 0.0 }
 0x297   : > { %v2626_v1 = vpop.f32.mrb[14].mxu0  ;;  %2953 = vmatprep.subr.bf16.mxu1 %v2952_v57  ;;  %v2716_v44 = vmax.f32 %v2623_v15, 0.0 }
 0x298   : > { %v2627_v27 = vadd.f32 %v2626_v1, %v2389_v50  ;;  %v2628_v61 = vpop.f32.mrb[15].mxu0  ;;  %2955 = vmatpush1.bf16.msra.mxu1 %v2954_v13 }
 0x299   : > { %v2629_v41 = vadd.f32 %v2628_v61, %v2389_v50  ;;  %v2429_v50 = vpop.permute.xlu0 %2428 }
 0x29a   : > { %v2717_v35 = vmax.f32 %v2627_v27, 0.0 }
 0x29b   : > { %v2718_v33 = vmax.f32 %v2629_v41, 0.0  ;;  %v2632_v32 = vpop.f32.mrb[16].mxu0 }
 0x29c   : > { %v2958_v11 = vpack.c.bf16 %v2717_v35, %v2715_v17  ;;  %v2634_v5 = vpop.f32.mrb[17].mxu0  ;;  %v2633_v53 = vadd.f32 %v2632_v32, %v2394_v37 }
 0x29d   : > { %v2956_v51 = vpack.c.bf16 %v2718_v33, %v2716_v44  ;;  %v2635_v58 = vadd.f32 %v2634_v5, %v2394_v37  ;;  %v2434_v37 = vpop.permute.xlu1 %2433 }
 0x29e   : > { %v2719_v56 = vmax.f32 %v2633_v53, 0.0 }
 0x29f   : > { %v2638_v63 = vpop.f32.mrb[18].mxu0  ;;  %2957 = vmatprep.subr.bf16.mxu1 %v2956_v51  ;;  %v2720_v28 = vmax.f32 %v2635_v58, 0.0 }
 0x2a0   : > { %v2639_v42 = vadd.f32 %v2638_v63, %v2399_v45  ;;  %v2640_v52 = vpop.f32.mrb[19].mxu0  ;;  %2959 = vmatpush1.bf16.msra.mxu1 %v2958_v11 }
 0x2a1   : > { %v2641_v49 = vadd.f32 %v2640_v52, %v2399_v45  ;;  %v2439_v45 = vpop.permute.xlu0 %2438 }
 0x2a2   : > { %v2721_v55 = vmax.f32 %v2639_v42, 0.0 }
 0x2a3   : > { %v2722_v24 = vmax.f32 %v2641_v49, 0.0  ;;  %v2644_v60 = vpop.f32.mrb[20].mxu0 }
 0x2a4   : > { %v2962_v48 = vpack.c.bf16 %v2721_v55, %v2719_v56  ;;  %v2646_v40 = vpop.f32.mrb[21].mxu0  ;;  %v2645_v62 = vadd.f32 %v2644_v60, %v2404_v54 }
 0x2a5   : > { %v2960_v20 = vpack.c.bf16 %v2722_v24, %v2720_v28  ;;  %v2647_v31 = vadd.f32 %v2646_v40, %v2404_v54  ;;  %v2444_v54 = vpop.permute.xlu1 %2443 }
 0x2a6   : > { %v2723_v18 = vmax.f32 %v2645_v62, 0.0 }
 0x2a7   : > { %v2650_v12 = vpop.f32.mrb[22].mxu0  ;;  %2961 = vmatprep.subr.bf16.mxu1 %v2960_v20  ;;  %v2724_v6 = vmax.f32 %v2647_v31, 0.0 }
 0x2a8   : > { %v2651_v14 = vadd.f32 %v2650_v12, %v2409_v19  ;;  %v2652_v36 = vpop.f32.mrb[23].mxu0  ;;  %2963 = vmatpush1.bf16.msra.mxu1 %v2962_v48 }
 0x2a9   : > { %v2653_v34 = vadd.f32 %v2652_v36, %v2409_v19  ;;  %v2449_v19 = vpop.permute.xlu0 %2448 }
 0x2aa   : > { %v2725_v8 = vmax.f32 %v2651_v14, 0.0 }
 0x2ab   : > { %v2726_v2 = vmax.f32 %v2653_v34, 0.0  ;;  %v2656_v3 = vpop.f32.mrb[24].mxu0 }
 0x2ac   : > { %v2966_v43 = vpack.c.bf16 %v2725_v8, %v2723_v18  ;;  %v2658_v29 = vpop.f32.mrb[25].mxu0  ;;  %v2657_v25 = vadd.f32 %v2656_v3, %v2414_v26 }
 0x2ad   : > { %v2964_v9 = vpack.c.bf16 %v2726_v2, %v2724_v6  ;;  %v2659_v39 = vadd.f32 %v2658_v29, %v2414_v26  ;;  %v2743_v29 = vld [vmem:[%s4937_s3] sm:$0xff]  ;;  %v2746_v26 = vld [vmem:[%s4937_s3 + $0x18] sm:$0x7] }
 0x2ae   : > { %v2727_v47 = vmax.f32 %v2657_v25, 0.0  ;;  %v2752_v25 = vpop.permute.xlu1 %2751 }
 0x2af   : > { %v2662_v10 = vpop.f32.mrb[26].mxu0  ;;  %2965 = vmatprep.subr.bf16.mxu1 %v2964_v9  ;;  %v2728_v0 = vmax.f32 %v2659_v39, 0.0  ;;  %v2745_v9 = vld [vmem:[%s4937_s3 + $0x10] sm:$0x7] }
 0x2b0   : > { %v2663_v59 = vadd.f32 %v2662_v10, %v2419_v23  ;;  %v2664_v38 = vpop.f32.mrb[27].mxu0  ;;  %2967 = vmatpush1.bf16.msra.mxu1 %v2966_v43 }
 0x2b1   : > { %v2665_v46 = vadd.f32 %v2664_v38, %v2419_v23  ;;  %v2757_v38 = vpop.permute.xlu0 %2756 }
 0x2b2   : > { %v2729_v30 = vmax.f32 %v2663_v59, 0.0 }
 0x2b3   : > { %v2730_v22 = vmax.f32 %v2665_v46, 0.0  ;;  %v2668_v4 = vpop.f32.mrb[28].mxu0 }
 0x2b4   : > { %v2970_v13 = vpack.c.bf16 %v2729_v30, %v2727_v47  ;;  %v2670_v16 = vpop.f32.mrb[29].mxu0  ;;  %v2669_v21 = vadd.f32 %v2668_v4, %v2424_v7 }
 0x2b5   : > { %v2968_v57 = vpack.c.bf16 %v2730_v22, %v2728_v0  ;;  %v2671_v15 = vadd.f32 %v2670_v16, %v2424_v7 }
 0x2b6   : > { %v2731_v17 = vmax.f32 %v2669_v21, 0.0 }
 0x2b7   : > { %v2674_v1 = vpop.f32.mrb[30].mxu0  ;;  %2969 = vmatprep.subr.bf16.mxu1 %v2968_v57  ;;  %v2732_v44 = vmax.f32 %v2671_v15, 0.0 }
 0x2b8   : > { %v2675_v27 = vadd.f32 %v2674_v1, %v2429_v50  ;;  %v2676_v61 = vpop.f32.mrb[31].mxu0  ;;  %2971 = vmatpush1.bf16.msra.mxu1 %v2970_v13 }
 0x2b9   : > { %v2677_v41 = vadd.f32 %v2676_v61, %v2429_v50 }
 0x2ba   : > { %v2733_v35 = vmax.f32 %v2675_v27, 0.0 }
 0x2bb   : > { %v2734_v33 = vmax.f32 %v2677_v41, 0.0  ;;  %v2680_v32 = vpop.f32.mrb[32].mxu0 }
 0x2bc   : > { %v2974_v11 = vpack.c.bf16 %v2733_v35, %v2731_v17  ;;  %v2682_v5 = vpop.f32.mrb[33].mxu0  ;;  %v2681_v53 = vadd.f32 %v2680_v32, %v2434_v37 }
 0x2bd   : > { %v2972_v51 = vpack.c.bf16 %v2734_v33, %v2732_v44  ;;  %v2683_v58 = vadd.f32 %v2682_v5, %v2434_v37 }
 0x2be   : > { %v2735_v56 = vmax.f32 %v2681_v53, 0.0 }
 0x2bf   : > { %v2686_v63 = vpop.f32.mrb[34].mxu0  ;;  %2973 = vmatprep.subr.bf16.mxu1 %v2972_v51  ;;  %v2736_v28 = vmax.f32 %v2683_v58, 0.0 }
 0x2c0   : > { %v2687_v42 = vadd.f32 %v2686_v63, %v2439_v45  ;;  %v2688_v52 = vpop.f32.mrb[35].mxu0  ;;  %2975 = vmatpush1.bf16.msra.mxu1 %v2974_v11 }
 0x2c1   : > { %v2689_v49 = vadd.f32 %v2688_v52, %v2439_v45 }
 0x2c2   : > { %v2737_v55 = vmax.f32 %v2687_v42, 0.0 }
 0x2c3   : > { %v2738_v24 = vmax.f32 %v2689_v49, 0.0  ;;  %v2692_v60 = vpop.f32.mrb[36].mxu0 }
 0x2c4   : > { %v2978_v48 = vpack.c.bf16 %v2737_v55, %v2735_v56  ;;  %v2694_v40 = vpop.f32.mrb[37].mxu0  ;;  %v2693_v62 = vadd.f32 %v2692_v60, %v2444_v54 }
 0x2c5   : > { %v2976_v20 = vpack.c.bf16 %v2738_v24, %v2736_v28  ;;  %v2695_v31 = vadd.f32 %v2694_v40, %v2444_v54 }
 0x2c6   : > { %v2739_v18 = vmax.f32 %v2693_v62, 0.0 }
 0x2c7   : > { %v2698_v12 = vpop.f32.mrb[38].mxu0  ;;  %2977 = vmatprep.subr.bf16.mxu1 %v2976_v20  ;;  %v2740_v6 = vmax.f32 %v2695_v31, 0.0 }
 0x2c8   : > { %v2699_v14 = vadd.f32 %v2698_v12, %v2449_v19  ;;  %v2700_v36 = vpop.f32.mrb[39].mxu0  ;;  %2979 = vmatpush1.bf16.msra.mxu1 %v2978_v48 }
 0x2c9   : > { %v2701_v34 = vadd.f32 %v2700_v36, %v2449_v19 }
 0x2ca   : > { %v2741_v8 = vmax.f32 %v2699_v14, 0.0 }
 0x2cb   : > { %v2742_v2 = vmax.f32 %v2701_v34, 0.0 }
 0x2cc   : > { %v2982_v3 = vpack.c.bf16 %v2741_v8, %v2739_v18 }
 0x2cd   : > { %v2980_v43 = vpack.c.bf16 %v2742_v2, %v2740_v6 }
 0x2cf   : > { %2981 = vmatprep.subr.bf16.mxu1 %v2980_v43 }
 0x2d0   : > { %2983 = vmatpush1.bf16.msra.mxu1 %v2982_v3 }
 0x2d3   : > { %2830 = vmatmul.mubr.f32.vlgmr.msra.gmra.mrb[0].mxu1 %v2743_v29 }
 0x2d4   : > { %2932 = vmatprep.mubr.msk.f32.mxu1 %vm427_vm1, %v2746_v26 }
 0x2d7   : > { %2836 = vmatmul.mubr.f32.gmra.mrb[2].mxu1 %v2745_v9 }
 0x3a6   : > { %v2831_v23 = vpop.f32.mrb[0].mxu1 }
 0x3a7   : > { %v2832_v39 = vadd.f32 %v2831_v23, %v2752_v25  ;;  %v2833_v10 = vpop.f32.mrb[1].mxu1 }
 0x3a8   : > { %v2834_v59 = vadd.f32 %v2833_v10, %v2752_v25 }
 0x3a9   : > { %2842 = vst [vmem:[%s224_s11] sm:$0xff] %v2832_v39 }
 0x3aa   : > { %2843 = vst [vmem:[%s224_s11 + $0x8] sm:$0xff] %v2834_v59  ;;  %v2837_v46 = vpop.f32.mrb[2].mxu1 }
 0x3ab   : > { %v2838_v47 = vadd.f32 %v2837_v46, %v2757_v38  ;;  %v2839_v30 = vpop.f32.mrb[3].mxu1 }
 0x3ac   : > { %v2840_v0 = vadd.f32 %v2839_v30, %v2757_v38 }
 0x3ad   : > { %2844 = vst [vmem:[%s224_s11 + $0x10] sm:$0x7] %v2838_v47 }
 0x3ae   : > { %2845 = vst [vmem:[%s224_s11 + $0x18] sm:$0x7] %v2840_v0 }
 0x3af PF: > { %s15_s18 = sadd.s32 1, %s3318_s18  }
 0x3b0   : > { %p12_p4 = scmp.ge.s32.totalorder %s15_s18, 4  }
 0x3b2   :  { %14 = sbr.rel (!%p12_p4) target bundleno = 1 (0x1), region = 70 }

</bundles_post_ra>
